<compile_context>
chip_gen: v7x
topology: tpu7x:2x2x1
jax: 0.10.0
libtpu: 0.0.40
codegen_flags: <defaults>
</compile_context>

<pallas_src>
import functools
import math

import jax
import jax.numpy as jnp
from jax.experimental import pallas as pl
from jax.experimental.pallas import tpu as pltpu

EPS = 1e-5
_TAPS = [(dy, dx) for dy in (-1, 0, 1) for dx in (-1, 0, 1)]   # row-major 3x3


# ----------------------------- fused Pallas kernel ---------------------------

def _ghost_kernel(x_ref, wcols_ref, wdw_ref, msk_ref,
                  g1_ref, b1_ref, g2_ref, b2_ref,
                  out_ref,
                  obuf_ref, s1_ref, q1_ref, s2_ref, q2_ref,
                  sc1_ref, sh1_ref, sco_ref, sho_ref,
                  *, B, Cin, Cmid, TB, H, W):
    HW = H * W
    TBC = TB * Cmid
    inv_n = 1.0 / float(B * HW)
    p = pl.program_id(0)          # phase
    t = pl.program_id(1)          # batch tile

    def conv1x1():
        """y[b*Cmid + c, :] = sum_ci w1[ci, c] * x[b*Cin + ci, :] (block-diag)."""
        x = x_ref[...]                                       # (TB*Cin, HW)
        if Cin <= 8:
            # Small contraction: per-column VPU FMA loop (exact f32, MXU skipped).
            y = jnp.zeros((TBC, HW), jnp.float32)
            for j in range(TB * Cin):
                y = y + wcols_ref[j] * x[j:j + 1, :]         # (TBC,1)*(1,HW)
            return y
        # Realistic channel counts: one MXU contraction over the input channels.
        w2d = wcols_ref[...][:, :, 0]                        # (TB*Cin, TBC)
        return jax.lax.dot_general(
            w2d, x, dimension_numbers=(((0,), (0,)), ((), ())),
            preferred_element_type=jnp.float32)

    def fold_rows(v):
        """(TB*Cmid, 1) per-row sums -> (Cmid, 1) per-channel sums."""
        tot = v[0:Cmid, :]
        for bl in range(1, TB):
            tot = tot + v[bl * Cmid:(bl + 1) * Cmid, :]
        return tot

    @pl.when(jnp.logical_and(p == 0, t == 0))
    def _init_stats():
        s1_ref[...] = jnp.zeros_like(s1_ref)
        q1_ref[...] = jnp.zeros_like(q1_ref)
        s2_ref[...] = jnp.zeros_like(s2_ref)
        q2_ref[...] = jnp.zeros_like(q2_ref)

    # ---------------- phase 0: 1x1 conv -> BN1 statistics only ----------------
    @pl.when(p == 0)
    def _phase0():
        y = conv1x1()
        s1_ref[...] += jnp.sum(y, axis=-1, keepdims=True)
        q1_ref[...] += jnp.sum(y * y, axis=-1, keepdims=True)

    # --------- finalize BN1 scale/shift once (stats complete after phase 0) ---
    @pl.when(jnp.logical_and(p == 1, t == 0))
    def _finalize_bn1():
        mean = fold_rows(s1_ref[...]) * inv_n
        var = jnp.maximum(fold_rows(q1_ref[...]) * inv_n - mean * mean, 0.0)
        scale = g1_ref[...] * jax.lax.rsqrt(var + EPS)
        shift = b1_ref[...] - mean * scale
        sc1_ref[...] = jnp.concatenate([scale] * TB, axis=0)   # tile per batch row
        sh1_ref[...] = jnp.concatenate([shift] * TB, axis=0)

    # ------ phase 1: recompute conv, BN1+ReLU, depthwise 3x3, BN2 stats -------
    @pl.when(p == 1)
    def _phase1():
        y = conv1x1()
        x1 = jnp.maximum(y * sc1_ref[...] + sh1_ref[...], 0.0)   # (TBC, HW)

        # Depthwise 3x3, "same" zero padding: lane rolls (XLU) + constant masks.
        masks = msk_ref[...]                                     # (9, HW)
        z = jnp.zeros((TBC, HW), jnp.float32)
        for k, (dy, dx) in enumerate(_TAPS):
            d = dy * W + dx
            # want src[pos] = x1[pos + d]  (roll(x, s)[i] = x[(i - s) mod N])
            src = x1 if d == 0 else pltpu.roll(x1, shift=(-d) % HW, axis=1)
            tap = wdw_ref[k]                                     # (TBC, 1)
            if dy == 0 and dx == 0:
                z = z + tap * src
            else:
                z = z + tap * (src * masks[k:k + 1, :])
        s2_ref[...] += jnp.sum(z, axis=-1, keepdims=True)
        q2_ref[...] += jnp.sum(z * z, axis=-1, keepdims=True)

        # Interleave into output row order: [x1_b ; z_b] per batch image.
        pieces = []
        for bl in range(TB):
            pieces.append(x1[bl * Cmid:(bl + 1) * Cmid, :])
            pieces.append(z[bl * Cmid:(bl + 1) * Cmid, :])
        obuf_ref[t] = jnp.concatenate(pieces, axis=0)            # (TB*2*Cmid, HW)

    # --------- finalize fused output scale/shift once (identity | BN2) --------
    @pl.when(jnp.logical_and(p == 2, t == 0))
    def _finalize_bn2():
        mean = fold_rows(s2_ref[...]) * inv_n
        var = jnp.maximum(fold_rows(q2_ref[...]) * inv_n - mean * mean, 0.0)
        scale2 = g2_ref[...] * jax.lax.rsqrt(var + EPS)
        shift2 = b2_ref[...] - mean * scale2
        one = jnp.ones((Cmid, 1), jnp.float32)
        zero = jnp.zeros((Cmid, 1), jnp.float32)
        # x1 rows pass through (scale 1, shift 0; ReLU idempotent on x1 >= 0).
        sco_ref[...] = jnp.concatenate([one, scale2] * TB, axis=0)
        sho_ref[...] = jnp.concatenate([zero, shift2] * TB, axis=0)

    # ---------- phase 2: fused affine + ReLU, single dense output store -------
    @pl.when(p == 2)
    def _phase2():
        out_ref[...] = jnp.maximum(
            obuf_ref[t] * sco_ref[...] + sho_ref[...], 0.0).astype(out_ref.dtype)


# ------------------------------ wrapper / glue --------------------------------

def _pick_tb(B, Cin, Cmid):
    """Fold just enough images per step to fill the 8 sublanes of a vreg."""
    need = max(1, 8 // max(1, min(Cin, Cmid)))
    tb = 1
    for cand in range(1, min(B, need) + 1):
        if B % cand == 0:
            tb = cand
    return tb


def ghost_module_forward(x_nchw, params, oup, out_dtype=jnp.float32):
    """Pallas GhostModule forward.  x_nchw: [B, inp, H, W] -> [B, oup, H, W]."""
    B, Cin, H, W = x_nchw.shape
    w1 = params["w_primary"]                   # [Cin, Cmid]
    Cmid = w1.shape[1]
    HW = H * W
    TB = _pick_tb(B, Cin, Cmid)
    NT = B // TB
    TBC = TB * Cmid
    R2 = TB * 2 * Cmid

    # Free, contiguous reshapes only (no HBM passes).
    x2d = x_nchw.reshape(B * Cin, HW)

    # Block-diagonal 1x1-conv weight, stored column-major: wcols[j, r] such that
    # y[r] = sum_j wcols[j, r] * x[j] with r = b*Cmid + c, j = b*Cin + ci.
    wcols = jnp.kron(jnp.eye(TB, dtype=jnp.float32), w1.astype(jnp.float32))
    wcols = wcols.reshape(TB * Cin, TBC, 1)

    # Depthwise 3x3 taps tiled over the TB images folded onto the sublane axis.
    wdw9 = jnp.tile(params["w_dw"].reshape(9, Cmid), (1, TB)).reshape(9, TBC, 1)

    # Zero-padding masks for the 3x3 taps (constant per geometry; hoisted out
    # of the kernel entirely -- review item).
    pos = jnp.arange(HW, dtype=jnp.int32)
    row, col = pos // W, pos % W
    masks = jnp.stack(
        [((row + dy >= 0) & (row + dy < H) & (col + dx >= 0) & (col + dx < W)
          ).astype(jnp.float32) for dy, dx in _TAPS], axis=0)     # (9, HW)

    g1 = params["g1"].reshape(Cmid, 1)
    b1 = params["b1"].reshape(Cmid, 1)
    g2 = params["g2"].reshape(Cmid, 1)
    b2 = params["b2"].reshape(Cmid, 1)

    kernel = functools.partial(_ghost_kernel, B=B, Cin=Cin, Cmid=Cmid,
                               TB=TB, H=H, W=W)

    # x is needed in phases 0 and 1 (conv recomputed instead of cached); in
    # phase 2 pin to the last fetched block so no spurious DMA is issued.
    x_map = lambda p, t: (jnp.where(p <= 1, t, NT - 1), 0)
    # Output only written in phase 2; park the window on block 0 before that so
    # no garbage block is ever flushed.
    out_map = lambda p, t: (jnp.where(p == 2, t, 0), 0)
    c2 = lambda p, t: (0, 0)
    c3 = lambda p, t: (0, 0, 0)

    vmem_need = (B * 2 * Cmid * HW * 4          # obuf scratch (whole batch)
                 + 2 * TB * Cin * HW * 4        # double-buffered x blocks
                 + 2 * R2 * HW * 4              # double-buffered out blocks
                 + (2 << 20))                   # weights/masks/stats headroom
    vmem_limit = int(min(max(vmem_need, 8 << 20), 64 << 20))
    # TODO(synk): at real GhostNet shapes obuf ~ B*2*Cmid*HW*4 bytes; add a
    # channel-tile grid axis (parallel on v7x megacore) once that nears VMEM.

    out2d = pl.pallas_call(
        kernel,
        out_shape=jax.ShapeDtypeStruct((B * 2 * Cmid, HW), out_dtype),
        grid=(3, NT),
        in_specs=[
            pl.BlockSpec((TB * Cin, HW), x_map),
            pl.BlockSpec((TB * Cin, TBC, 1), c3),
            pl.BlockSpec((9, TBC, 1), c3),
            pl.BlockSpec((9, HW), c2),
            pl.BlockSpec((Cmid, 1), c2),
            pl.BlockSpec((Cmid, 1), c2),
            pl.BlockSpec((Cmid, 1), c2),
            pl.BlockSpec((Cmid, 1), c2),
        ],
        out_specs=pl.BlockSpec((R2, HW), out_map),
        scratch_shapes=[
            pltpu.VMEM((NT, R2, HW), jnp.float32),   # x1/z interleaved (out layout)
            pltpu.VMEM((TBC, 1), jnp.float32),       # sum1   (per-row partials)
            pltpu.VMEM((TBC, 1), jnp.float32),       # sumsq1
            pltpu.VMEM((TBC, 1), jnp.float32),       # sum2
            pltpu.VMEM((TBC, 1), jnp.float32),       # sumsq2
            pltpu.VMEM((TBC, 1), jnp.float32),       # BN1 scale (row-tiled)
            pltpu.VMEM((TBC, 1), jnp.float32),       # BN1 shift
            pltpu.VMEM((R2, 1), jnp.float32),        # fused out scale (id | BN2)
            pltpu.VMEM((R2, 1), jnp.float32),        # fused out shift
        ],
        compiler_params=pltpu.CompilerParams(
            dimension_semantics=("arbitrary", "arbitrary"),
            vmem_limit_bytes=vmem_limit),
    )(x2d, wcols, wdw9, masks, g1, b1, g2, b2)

    out = out2d.reshape(B, 2 * Cmid, H, W)
    return out[:, :oup]


# ------------------------------ parameters ------------------------------------

def init_params(key, inp, oup, ratio=2, dw_size=3):
    init_channels = math.ceil(oup / ratio)
    new_channels = init_channels * (ratio - 1)
    assert new_channels == init_channels, "fused path implemented for ratio=2"
    k1, k2 = jax.random.split(key)
    # primary conv weight: PyTorch [Cmid, Cin, 1, 1] stored as [Cin, Cmid]
    w_primary = jax.random.normal(k1, (inp, init_channels), jnp.float32) * (2.0 / inp) ** 0.5
    # depthwise weight: PyTorch [Cnew, 1, 3, 3] stored as [3, 3, Cnew]
    w_dw = jax.random.normal(k2, (dw_size, dw_size, new_channels), jnp.float32) \
        * (2.0 / (dw_size * dw_size)) ** 0.5
    g1 = 1.0 + 0.10 * jnp.arange(init_channels, dtype=jnp.float32)
    b1 = 0.05 * jnp.arange(init_channels, dtype=jnp.float32)
    g2 = 1.0 - 0.05 * jnp.arange(new_channels, dtype=jnp.float32)
    b2 = 0.02 * jnp.arange(new_channels, dtype=jnp.float32)
    return dict(w_primary=w_primary, w_dw=w_dw, g1=g1, b1=b1, g2=g2, b2=b2)


# ------------------------------ pure-JAX reference -----------------------------

def reference_forward(x_nchw, params, oup):
    B, Cin, H, W = x_nchw.shape
    y = jnp.einsum("bchw,co->bohw", x_nchw, params["w_primary"])
    mean = y.mean(axis=(0, 2, 3), keepdims=True)
    var = ((y - mean) ** 2).mean(axis=(0, 2, 3), keepdims=True)
    g1 = params["g1"].reshape(1, -1, 1, 1)
    b1 = params["b1"].reshape(1, -1, 1, 1)
    x1 = jnp.maximum((y - mean) * jax.lax.rsqrt(var + EPS) * g1 + b1, 0.0)

    x1p = jnp.pad(x1, ((0, 0), (0, 0), (1, 1), (1, 1)))
    wd = params["w_dw"]
    acc = jnp.zeros_like(x1)
    for dy in range(3):
        for dx in range(3):
            acc = acc + x1p[:, :, dy:dy + H, dx:dx + W] * wd[dy, dx, :].reshape(1, -1, 1, 1)
    mean2 = acc.mean(axis=(0, 2, 3), keepdims=True)
    var2 = ((acc - mean2) ** 2).mean(axis=(0, 2, 3), keepdims=True)
    g2 = params["g2"].reshape(1, -1, 1, 1)
    b2 = params["b2"].reshape(1, -1, 1, 1)
    x2 = jnp.maximum((acc - mean2) * jax.lax.rsqrt(var2 + EPS) * g2 + b2, 0.0)

    return jnp.concatenate([x1, x2], axis=1)[:, :oup, :, :]


# ---------------------------------- main ---------------------------------------

if __name__ == "__main__":
    INP, OUP = 4, 8
    B, H, W = 2, 16, 16

    key = jax.random.PRNGKey(0)
    k_x, k_p = jax.random.split(key)
    x = jax.random.normal(k_x, (B, INP, H, W), jnp.float32)
    params = init_params(k_p, INP, OUP)

    out = ghost_module_forward(x, params, OUP)
    out = jax.block_until_ready(out)

    ref = jax.block_until_ready(reference_forward(x, params, OUP))
    assert out.shape == (B, OUP, H, W), out.shape
    assert jnp.allclose(out, ref, rtol=1e-3, atol=1e-3), \
        f"max abs err {jnp.max(jnp.abs(out - ref))}"

    print("KERNEL_OK")
</pallas_src>

<mosaic_0001>
module attributes {stable_mosaic.version = 11 : i64} {
  func.func @_ghost_kernel(%arg0: i32, %arg1: i32, %arg2: memref<8x256xf32, #tpu.memory_space<vmem>>, %arg3: memref<8x8x1xf32, #tpu.memory_space<vmem>>, %arg4: memref<9x8x1xf32, #tpu.memory_space<vmem>>, %arg5: memref<9x256xf32, #tpu.memory_space<vmem>>, %arg6: memref<4x1xf32, #tpu.memory_space<vmem>>, %arg7: memref<4x1xf32, #tpu.memory_space<vmem>>, %arg8: memref<4x1xf32, #tpu.memory_space<vmem>>, %arg9: memref<4x1xf32, #tpu.memory_space<vmem>>, %arg10: memref<16x256xf32, #tpu.memory_space<vmem>>, %arg11: memref<1x16x256xf32, #tpu.memory_space<vmem>>, %arg12: memref<8x1xf32, #tpu.memory_space<vmem>>, %arg13: memref<8x1xf32, #tpu.memory_space<vmem>>, %arg14: memref<8x1xf32, #tpu.memory_space<vmem>>, %arg15: memref<8x1xf32, #tpu.memory_space<vmem>>, %arg16: memref<8x1xf32, #tpu.memory_space<vmem>>, %arg17: memref<8x1xf32, #tpu.memory_space<vmem>>, %arg18: memref<16x1xf32, #tpu.memory_space<vmem>>, %arg19: memref<16x1xf32, #tpu.memory_space<vmem>>) attributes {dimension_semantics = [#tpu.dimension_semantics<arbitrary>, #tpu.dimension_semantics<arbitrary>], iteration_bounds = array<i64: 3, 1>, scalar_prefetch = 0 : i64, scratch_operands = 9 : i64, tpu.core_type = #tpu.core_type<tc>, window_params = [{transform_indices = @transform_0, window_bounds = array<i64: 8, 256>}, {pipeline_mode = #tpu.pipeline_mode<synchronous>, transform_indices = @transform_1, window_bounds = array<i64: 8, 8, 1>}, {pipeline_mode = #tpu.pipeline_mode<synchronous>, transform_indices = @transform_2, window_bounds = array<i64: 9, 8, 1>}, {pipeline_mode = #tpu.pipeline_mode<synchronous>, transform_indices = @transform_3, window_bounds = array<i64: 9, 256>}, {pipeline_mode = #tpu.pipeline_mode<synchronous>, transform_indices = @transform_4, window_bounds = array<i64: 4, 1>}, {pipeline_mode = #tpu.pipeline_mode<synchronous>, transform_indices = @transform_5, window_bounds = array<i64: 4, 1>}, {pipeline_mode = #tpu.pipeline_mode<synchronous>, transform_indices = @transform_6, window_bounds = array<i64: 4, 1>}, {pipeline_mode = #tpu.pipeline_mode<synchronous>, transform_indices = @transform_7, window_bounds = array<i64: 4, 1>}, {transform_indices = @transform_8, window_bounds = array<i64: 16, 256>}]} {
    %c0_i32 = arith.constant 0 : i32
    %0 = arith.cmpi eq, %arg0, %c0_i32 : i32
    %c0_i32_0 = arith.constant 0 : i32
    %1 = arith.cmpi eq, %arg1, %c0_i32_0 : i32
    %2 = arith.andi %0, %1 : i1
    %3 = arith.extui %2 : i1 to i32
    %c0_i32_1 = arith.constant 0 : i32
    %4 = arith.cmpi ne, %3, %c0_i32_1 : i32
    scf.if %4 {
      %cst = arith.constant 0.000000e+00 : f32
      %24 = vector.broadcast %cst : f32 to vector<8x1xf32>
      %c0 = arith.constant 0 : index
      %c0_12 = arith.constant 0 : index
      %25 = vector.load %arg12[%c0, %c0_12] : memref<8x1xf32, #tpu.memory_space<vmem>>, vector<8x1xf32>
      tpu.vector_store %arg12[%c0, %c0_12], %24 {strides = array<i32>} : memref<8x1xf32, #tpu.memory_space<vmem>>, vector<8x1xf32>,
      %cst_13 = arith.constant 0.000000e+00 : f32
      %26 = vector.broadcast %cst_13 : f32 to vector<8x1xf32>
      %c0_14 = arith.constant 0 : index
      %c0_15 = arith.constant 0 : index
      %27 = vector.load %arg13[%c0_14, %c0_15] : memref<8x1xf32, #tpu.memory_space<vmem>>, vector<8x1xf32>
      tpu.vector_store %arg13[%c0_14, %c0_15], %26 {strides = array<i32>} : memref<8x1xf32, #tpu.memory_space<vmem>>, vector<8x1xf32>,
      %cst_16 = arith.constant 0.000000e+00 : f32
      %28 = vector.broadcast %cst_16 : f32 to vector<8x1xf32>
      %c0_17 = arith.constant 0 : index
      %c0_18 = arith.constant 0 : index
      %29 = vector.load %arg14[%c0_17, %c0_18] : memref<8x1xf32, #tpu.memory_space<vmem>>, vector<8x1xf32>
      tpu.vector_store %arg14[%c0_17, %c0_18], %28 {strides = array<i32>} : memref<8x1xf32, #tpu.memory_space<vmem>>, vector<8x1xf32>,
      %cst_19 = arith.constant 0.000000e+00 : f32
      %30 = vector.broadcast %cst_19 : f32 to vector<8x1xf32>
      %c0_20 = arith.constant 0 : index
      %c0_21 = arith.constant 0 : index
      %31 = vector.load %arg15[%c0_20, %c0_21] : memref<8x1xf32, #tpu.memory_space<vmem>>, vector<8x1xf32>
      tpu.vector_store %arg15[%c0_20, %c0_21], %30 {strides = array<i32>} : memref<8x1xf32, #tpu.memory_space<vmem>>, vector<8x1xf32>,
    } else {
    }
    %c0_i32_2 = arith.constant 0 : i32
    %5 = arith.cmpi eq, %arg0, %c0_i32_2 : i32
    %6 = arith.extui %5 : i1 to i32
    %c0_i32_3 = arith.constant 0 : i32
    %7 = arith.cmpi ne, %6, %c0_i32_3 : i32
    scf.if %7 {
      %c0 = arith.constant 0 : index
      %c0_12 = arith.constant 0 : index
      %24 = vector.load %arg2[%c0, %c0_12] : memref<8x256xf32, #tpu.memory_space<vmem>>, vector<8x256xf32>
      %cst = arith.constant 0.000000e+00 : f32
      %25 = vector.broadcast %cst : f32 to vector<8x256xf32>
      %c0_13 = arith.constant 0 : index
      %c0_14 = arith.constant 0 : index
      %c0_15 = arith.constant 0 : index
      %26 = vector.load %arg3[%c0_13, %c0_14, %c0_15] : memref<8x8x1xf32, #tpu.memory_space<vmem>>, vector<1x8x1xf32>
      %27 = vector.shape_cast %26 : vector<1x8x1xf32> to vector<8x1xf32>
      %28 = vector.extract_strided_slice %24 {offsets = [0, 0], sizes = [1, 256], strides = [1, 1]} : vector<8x256xf32> to vector<1x256xf32>
      %29 = vector.broadcast %27 : vector<8x1xf32> to vector<8x256xf32>
      %30 = vector.broadcast %28 : vector<1x256xf32> to vector<8x256xf32>
      %31 = arith.mulf %29, %30 : vector<8x256xf32>
      %32 = arith.addf %25, %31 : vector<8x256xf32>
      %c1 = arith.constant 1 : index
      %c0_16 = arith.constant 0 : index
      %c0_17 = arith.constant 0 : index
      %33 = vector.load %arg3[%c1, %c0_16, %c0_17] : memref<8x8x1xf32, #tpu.memory_space<vmem>>, vector<1x8x1xf32>
      %34 = vector.shape_cast %33 : vector<1x8x1xf32> to vector<8x1xf32>
      %35 = vector.extract_strided_slice %24 {offsets = [1, 0], sizes = [1, 256], strides = [1, 1]} : vector<8x256xf32> to vector<1x256xf32>
      %36 = vector.broadcast %34 : vector<8x1xf32> to vector<8x256xf32>
      %37 = vector.broadcast %35 : vector<1x256xf32> to vector<8x256xf32>
      %38 = arith.mulf %36, %37 : vector<8x256xf32>
      %39 = arith.addf %32, %38 : vector<8x256xf32>
      %c2 = arith.constant 2 : index
      %c0_18 = arith.constant 0 : index
      %c0_19 = arith.constant 0 : index
      %40 = vector.load %arg3[%c2, %c0_18, %c0_19] : memref<8x8x1xf32, #tpu.memory_space<vmem>>, vector<1x8x1xf32>
      %41 = vector.shape_cast %40 : vector<1x8x1xf32> to vector<8x1xf32>
      %42 = vector.extract_strided_slice %24 {offsets = [2, 0], sizes = [1, 256], strides = [1, 1]} : vector<8x256xf32> to vector<1x256xf32>
      %43 = vector.broadcast %41 : vector<8x1xf32> to vector<8x256xf32>
      %44 = vector.broadcast %42 : vector<1x256xf32> to vector<8x256xf32>
      %45 = arith.mulf %43, %44 : vector<8x256xf32>
      %46 = arith.addf %39, %45 : vector<8x256xf32>
      %c3 = arith.constant 3 : index
      %c0_20 = arith.constant 0 : index
      %c0_21 = arith.constant 0 : index
      %47 = vector.load %arg3[%c3, %c0_20, %c0_21] : memref<8x8x1xf32, #tpu.memory_space<vmem>>, vector<1x8x1xf32>
      %48 = vector.shape_cast %47 : vector<1x8x1xf32> to vector<8x1xf32>
      %49 = vector.extract_strided_slice %24 {offsets = [3, 0], sizes = [1, 256], strides = [1, 1]} : vector<8x256xf32> to vector<1x256xf32>
      %50 = vector.broadcast %48 : vector<8x1xf32> to vector<8x256xf32>
      %51 = vector.broadcast %49 : vector<1x256xf32> to vector<8x256xf32>
      %52 = arith.mulf %50, %51 : vector<8x256xf32>
      %53 = arith.addf %46, %52 : vector<8x256xf32>
      %c4 = arith.constant 4 : index
      %c0_22 = arith.constant 0 : index
      %c0_23 = arith.constant 0 : index
      %54 = vector.load %arg3[%c4, %c0_22, %c0_23] : memref<8x8x1xf32, #tpu.memory_space<vmem>>, vector<1x8x1xf32>
      %55 = vector.shape_cast %54 : vector<1x8x1xf32> to vector<8x1xf32>
      %56 = vector.extract_strided_slice %24 {offsets = [4, 0], sizes = [1, 256], strides = [1, 1]} : vector<8x256xf32> to vector<1x256xf32>
      %57 = vector.broadcast %55 : vector<8x1xf32> to vector<8x256xf32>
      %58 = vector.broadcast %56 : vector<1x256xf32> to vector<8x256xf32>
      %59 = arith.mulf %57, %58 : vector<8x256xf32>
      %60 = arith.addf %53, %59 : vector<8x256xf32>
      %c5 = arith.constant 5 : index
      %c0_24 = arith.constant 0 : index
      %c0_25 = arith.constant 0 : index
      %61 = vector.load %arg3[%c5, %c0_24, %c0_25] : memref<8x8x1xf32, #tpu.memory_space<vmem>>, vector<1x8x1xf32>
      %62 = vector.shape_cast %61 : vector<1x8x1xf32> to vector<8x1xf32>
      %63 = vector.extract_strided_slice %24 {offsets = [5, 0], sizes = [1, 256], strides = [1, 1]} : vector<8x256xf32> to vector<1x256xf32>
      %64 = vector.broadcast %62 : vector<8x1xf32> to vector<8x256xf32>
      %65 = vector.broadcast %63 : vector<1x256xf32> to vector<8x256xf32>
      %66 = arith.mulf %64, %65 : vector<8x256xf32>
      %67 = arith.addf %60, %66 : vector<8x256xf32>
      %c6 = arith.constant 6 : index
      %c0_26 = arith.constant 0 : index
      %c0_27 = arith.constant 0 : index
      %68 = vector.load %arg3[%c6, %c0_26, %c0_27] : memref<8x8x1xf32, #tpu.memory_space<vmem>>, vector<1x8x1xf32>
      %69 = vector.shape_cast %68 : vector<1x8x1xf32> to vector<8x1xf32>
      %70 = vector.extract_strided_slice %24 {offsets = [6, 0], sizes = [1, 256], strides = [1, 1]} : vector<8x256xf32> to vector<1x256xf32>
      %71 = vector.broadcast %69 : vector<8x1xf32> to vector<8x256xf32>
      %72 = vector.broadcast %70 : vector<1x256xf32> to vector<8x256xf32>
      %73 = arith.mulf %71, %72 : vector<8x256xf32>
      %74 = arith.addf %67, %73 : vector<8x256xf32>
      %c7 = arith.constant 7 : index
      %c0_28 = arith.constant 0 : index
      %c0_29 = arith.constant 0 : index
      %75 = vector.load %arg3[%c7, %c0_28, %c0_29] : memref<8x8x1xf32, #tpu.memory_space<vmem>>, vector<1x8x1xf32>
      %76 = vector.shape_cast %75 : vector<1x8x1xf32> to vector<8x1xf32>
      %77 = vector.extract_strided_slice %24 {offsets = [7, 0], sizes = [1, 256], strides = [1, 1]} : vector<8x256xf32> to vector<1x256xf32>
      %78 = vector.broadcast %76 : vector<8x1xf32> to vector<8x256xf32>
      %79 = vector.broadcast %77 : vector<1x256xf32> to vector<8x256xf32>
      %80 = arith.mulf %78, %79 : vector<8x256xf32>
      %81 = arith.addf %74, %80 : vector<8x256xf32>
      %c0_30 = arith.constant 0 : index
      %c0_31 = arith.constant 0 : index
      %82 = vector.load %arg12[%c0_30, %c0_31] : memref<8x1xf32, #tpu.memory_space<vmem>>, vector<8x1xf32>
      %cst_32 = arith.constant dense<0.000000e+00> : vector<8xf32>
      %83 = vector.multi_reduction <add>, %81, %cst_32 [1] : vector<8x256xf32> to vector<8xf32>
      %84 = vector.shape_cast %83 : vector<8xf32> to vector<8x1xf32>
      %85 = arith.addf %82, %84 : vector<8x1xf32>
      %c0_33 = arith.constant 0 : index
      %c0_34 = arith.constant 0 : index
      %86 = vector.load %arg12[%c0_33, %c0_34] : memref<8x1xf32, #tpu.memory_space<vmem>>, vector<8x1xf32>
      tpu.vector_store %arg12[%c0_33, %c0_34], %85 {strides = array<i32>} : memref<8x1xf32, #tpu.memory_space<vmem>>, vector<8x1xf32>,
      %c0_35 = arith.constant 0 : index
      %c0_36 = arith.constant 0 : index
      %87 = vector.load %arg13[%c0_35, %c0_36] : memref<8x1xf32, #tpu.memory_space<vmem>>, vector<8x1xf32>
      %88 = arith.mulf %81, %81 : vector<8x256xf32>
      %cst_37 = arith.constant dense<0.000000e+00> : vector<8xf32>
      %89 = vector.multi_reduction <add>, %88, %cst_37 [1] : vector<8x256xf32> to vector<8xf32>
      %90 = vector.shape_cast %89 : vector<8xf32> to vector<8x1xf32>
      %91 = arith.addf %87, %90 : vector<8x1xf32>
      %c0_38 = arith.constant 0 : index
      %c0_39 = arith.constant 0 : index
      %92 = vector.load %arg13[%c0_38, %c0_39] : memref<8x1xf32, #tpu.memory_space<vmem>>, vector<8x1xf32>
      tpu.vector_store %arg13[%c0_38, %c0_39], %91 {strides = array<i32>} : memref<8x1xf32, #tpu.memory_space<vmem>>, vector<8x1xf32>,
    } else {
    }
    %c1_i32 = arith.constant 1 : i32
    %8 = arith.cmpi eq, %arg0, %c1_i32 : i32
    %c0_i32_4 = arith.constant 0 : i32
    %9 = arith.cmpi eq, %arg1, %c0_i32_4 : i32
    %10 = arith.andi %8, %9 : i1
    %11 = arith.extui %10 : i1 to i32
    %c0_i32_5 = arith.constant 0 : i32
    %12 = arith.cmpi ne, %11, %c0_i32_5 : i32
    scf.if %12 {
      %c0 = arith.constant 0 : index
      %c0_12 = arith.constant 0 : index
      %24 = vector.load %arg12[%c0, %c0_12] : memref<8x1xf32, #tpu.memory_space<vmem>>, vector<8x1xf32>
      %25 = vector.extract_strided_slice %24 {offsets = [0, 0], sizes = [4, 1], strides = [1, 1]} : vector<8x1xf32> to vector<4x1xf32>
      %26 = vector.extract_strided_slice %24 {offsets = [4, 0], sizes = [4, 1], strides = [1, 1]} : vector<8x1xf32> to vector<4x1xf32>
      %27 = arith.addf %25, %26 : vector<4x1xf32>
      %cst = arith.constant 0.001953125 : f32
      %28 = vector.broadcast %cst : f32 to vector<4x1xf32>
      %29 = arith.mulf %27, %28 : vector<4x1xf32>
      %c0_13 = arith.constant 0 : index
      %c0_14 = arith.constant 0 : index
      %30 = vector.load %arg13[%c0_13, %c0_14] : memref<8x1xf32, #tpu.memory_space<vmem>>, vector<8x1xf32>
      %31 = vector.extract_strided_slice %30 {offsets = [0, 0], sizes = [4, 1], strides = [1, 1]} : vector<8x1xf32> to vector<4x1xf32>
      %32 = vector.extract_strided_slice %30 {offsets = [4, 0], sizes = [4, 1], strides = [1, 1]} : vector<8x1xf32> to vector<4x1xf32>
      %33 = arith.addf %31, %32 : vector<4x1xf32>
      %cst_15 = arith.constant 0.001953125 : f32
      %34 = vector.broadcast %cst_15 : f32 to vector<4x1xf32>
      %35 = arith.mulf %33, %34 : vector<4x1xf32>
      %36 = arith.mulf %29, %29 : vector<4x1xf32>
      %37 = arith.subf %35, %36 : vector<4x1xf32>
      %cst_16 = arith.constant 0.000000e+00 : f32
      %38 = vector.broadcast %cst_16 : f32 to vector<4x1xf32>
      %39 = arith.maximumf %37, %38 : vector<4x1xf32>
      %c0_17 = arith.constant 0 : index
      %c0_18 = arith.constant 0 : index
      %40 = vector.load %arg6[%c0_17, %c0_18] : memref<4x1xf32, #tpu.memory_space<vmem>>, vector<4x1xf32>
      %cst_19 = arith.constant 9.99999974E-6 : f32
      %41 = vector.broadcast %cst_19 : f32 to vector<4x1xf32>
      %42 = arith.addf %39, %41 : vector<4x1xf32>
      %43 = math.rsqrt %42 : vector<4x1xf32>
      %44 = arith.mulf %40, %43 : vector<4x1xf32>
      %c0_20 = arith.constant 0 : index
      %c0_21 = arith.constant 0 : index
      %45 = vector.load %arg7[%c0_20, %c0_21] : memref<4x1xf32, #tpu.memory_space<vmem>>, vector<4x1xf32>
      %46 = arith.mulf %29, %44 : vector<4x1xf32>
      %47 = arith.subf %45, %46 : vector<4x1xf32>
      %48 = tpu.concatenate %44, %44 in 0 : vector<4x1xf32>, vector<4x1xf32> -> vector<8x1xf32>
      %c0_22 = arith.constant 0 : index
      %c0_23 = arith.constant 0 : index
      %49 = vector.load %arg16[%c0_22, %c0_23] : memref<8x1xf32, #tpu.memory_space<vmem>>, vector<8x1xf32>
      tpu.vector_store %arg16[%c0_22, %c0_23], %48 {strides = array<i32>} : memref<8x1xf32, #tpu.memory_space<vmem>>, vector<8x1xf32>,
      %50 = tpu.concatenate %47, %47 in 0 : vector<4x1xf32>, vector<4x1xf32> -> vector<8x1xf32>
      %c0_24 = arith.constant 0 : index
      %c0_25 = arith.constant 0 : index
      %51 = vector.load %arg17[%c0_24, %c0_25] : memref<8x1xf32, #tpu.memory_space<vmem>>, vector<8x1xf32>
      tpu.vector_store %arg17[%c0_24, %c0_25], %50 {strides = array<i32>} : memref<8x1xf32, #tpu.memory_space<vmem>>, vector<8x1xf32>,
    } else {
    }
    %c1_i32_6 = arith.constant 1 : i32
    %13 = arith.cmpi eq, %arg0, %c1_i32_6 : i32
    %14 = arith.extui %13 : i1 to i32
    %c0_i32_7 = arith.constant 0 : i32
    %15 = arith.cmpi ne, %14, %c0_i32_7 : i32
    scf.if %15 {
      %c0 = arith.constant 0 : index
      %c0_12 = arith.constant 0 : index
      %24 = vector.load %arg2[%c0, %c0_12] : memref<8x256xf32, #tpu.memory_space<vmem>>, vector<8x256xf32>
      %cst = arith.constant 0.000000e+00 : f32
      %25 = vector.broadcast %cst : f32 to vector<8x256xf32>
      %c0_13 = arith.constant 0 : index
      %c0_14 = arith.constant 0 : index
      %c0_15 = arith.constant 0 : index
      %26 = vector.load %arg3[%c0_13, %c0_14, %c0_15] : memref<8x8x1xf32, #tpu.memory_space<vmem>>, vector<1x8x1xf32>
      %27 = vector.shape_cast %26 : vector<1x8x1xf32> to vector<8x1xf32>
      %28 = vector.extract_strided_slice %24 {offsets = [0, 0], sizes = [1, 256], strides = [1, 1]} : vector<8x256xf32> to vector<1x256xf32>
      %29 = vector.broadcast %27 : vector<8x1xf32> to vector<8x256xf32>
      %30 = vector.broadcast %28 : vector<1x256xf32> to vector<8x256xf32>
      %31 = arith.mulf %29, %30 : vector<8x256xf32>
      %32 = arith.addf %25, %31 : vector<8x256xf32>
      %c1 = arith.constant 1 : index
      %c0_16 = arith.constant 0 : index
      %c0_17 = arith.constant 0 : index
      %33 = vector.load %arg3[%c1, %c0_16, %c0_17] : memref<8x8x1xf32, #tpu.memory_space<vmem>>, vector<1x8x1xf32>
      %34 = vector.shape_cast %33 : vector<1x8x1xf32> to vector<8x1xf32>
      %35 = vector.extract_strided_slice %24 {offsets = [1, 0], sizes = [1, 256], strides = [1, 1]} : vector<8x256xf32> to vector<1x256xf32>
      %36 = vector.broadcast %34 : vector<8x1xf32> to vector<8x256xf32>
      %37 = vector.broadcast %35 : vector<1x256xf32> to vector<8x256xf32>
      %38 = arith.mulf %36, %37 : vector<8x256xf32>
      %39 = arith.addf %32, %38 : vector<8x256xf32>
      %c2 = arith.constant 2 : index
      %c0_18 = arith.constant 0 : index
      %c0_19 = arith.constant 0 : index
      %40 = vector.load %arg3[%c2, %c0_18, %c0_19] : memref<8x8x1xf32, #tpu.memory_space<vmem>>, vector<1x8x1xf32>
      %41 = vector.shape_cast %40 : vector<1x8x1xf32> to vector<8x1xf32>
      %42 = vector.extract_strided_slice %24 {offsets = [2, 0], sizes = [1, 256], strides = [1, 1]} : vector<8x256xf32> to vector<1x256xf32>
      %43 = vector.broadcast %41 : vector<8x1xf32> to vector<8x256xf32>
      %44 = vector.broadcast %42 : vector<1x256xf32> to vector<8x256xf32>
      %45 = arith.mulf %43, %44 : vector<8x256xf32>
      %46 = arith.addf %39, %45 : vector<8x256xf32>
      %c3 = arith.constant 3 : index
      %c0_20 = arith.constant 0 : index
      %c0_21 = arith.constant 0 : index
      %47 = vector.load %arg3[%c3, %c0_20, %c0_21] : memref<8x8x1xf32, #tpu.memory_space<vmem>>, vector<1x8x1xf32>
      %48 = vector.shape_cast %47 : vector<1x8x1xf32> to vector<8x1xf32>
      %49 = vector.extract_strided_slice %24 {offsets = [3, 0], sizes = [1, 256], strides = [1, 1]} : vector<8x256xf32> to vector<1x256xf32>
      %50 = vector.broadcast %48 : vector<8x1xf32> to vector<8x256xf32>
      %51 = vector.broadcast %49 : vector<1x256xf32> to vector<8x256xf32>
      %52 = arith.mulf %50, %51 : vector<8x256xf32>
      %53 = arith.addf %46, %52 : vector<8x256xf32>
      %c4 = arith.constant 4 : index
      %c0_22 = arith.constant 0 : index
      %c0_23 = arith.constant 0 : index
      %54 = vector.load %arg3[%c4, %c0_22, %c0_23] : memref<8x8x1xf32, #tpu.memory_space<vmem>>, vector<1x8x1xf32>
      %55 = vector.shape_cast %54 : vector<1x8x1xf32> to vector<8x1xf32>
      %56 = vector.extract_strided_slice %24 {offsets = [4, 0], sizes = [1, 256], strides = [1, 1]} : vector<8x256xf32> to vector<1x256xf32>
      %57 = vector.broadcast %55 : vector<8x1xf32> to vector<8x256xf32>
      %58 = vector.broadcast %56 : vector<1x256xf32> to vector<8x256xf32>
      %59 = arith.mulf %57, %58 : vector<8x256xf32>
      %60 = arith.addf %53, %59 : vector<8x256xf32>
      %c5 = arith.constant 5 : index
      %c0_24 = arith.constant 0 : index
      %c0_25 = arith.constant 0 : index
      %61 = vector.load %arg3[%c5, %c0_24, %c0_25] : memref<8x8x1xf32, #tpu.memory_space<vmem>>, vector<1x8x1xf32>
      %62 = vector.shape_cast %61 : vector<1x8x1xf32> to vector<8x1xf32>
      %63 = vector.extract_strided_slice %24 {offsets = [5, 0], sizes = [1, 256], strides = [1, 1]} : vector<8x256xf32> to vector<1x256xf32>
      %64 = vector.broadcast %62 : vector<8x1xf32> to vector<8x256xf32>
      %65 = vector.broadcast %63 : vector<1x256xf32> to vector<8x256xf32>
      %66 = arith.mulf %64, %65 : vector<8x256xf32>
      %67 = arith.addf %60, %66 : vector<8x256xf32>
      %c6 = arith.constant 6 : index
      %c0_26 = arith.constant 0 : index
      %c0_27 = arith.constant 0 : index
      %68 = vector.load %arg3[%c6, %c0_26, %c0_27] : memref<8x8x1xf32, #tpu.memory_space<vmem>>, vector<1x8x1xf32>
      %69 = vector.shape_cast %68 : vector<1x8x1xf32> to vector<8x1xf32>
      %70 = vector.extract_strided_slice %24 {offsets = [6, 0], sizes = [1, 256], strides = [1, 1]} : vector<8x256xf32> to vector<1x256xf32>
      %71 = vector.broadcast %69 : vector<8x1xf32> to vector<8x256xf32>
      %72 = vector.broadcast %70 : vector<1x256xf32> to vector<8x256xf32>
      %73 = arith.mulf %71, %72 : vector<8x256xf32>
      %74 = arith.addf %67, %73 : vector<8x256xf32>
      %c7 = arith.constant 7 : index
      %c0_28 = arith.constant 0 : index
      %c0_29 = arith.constant 0 : index
      %75 = vector.load %arg3[%c7, %c0_28, %c0_29] : memref<8x8x1xf32, #tpu.memory_space<vmem>>, vector<1x8x1xf32>
      %76 = vector.shape_cast %75 : vector<1x8x1xf32> to vector<8x1xf32>
      %77 = vector.extract_strided_slice %24 {offsets = [7, 0], sizes = [1, 256], strides = [1, 1]} : vector<8x256xf32> to vector<1x256xf32>
      %78 = vector.broadcast %76 : vector<8x1xf32> to vector<8x256xf32>
      %79 = vector.broadcast %77 : vector<1x256xf32> to vector<8x256xf32>
      %80 = arith.mulf %78, %79 : vector<8x256xf32>
      %81 = arith.addf %74, %80 : vector<8x256xf32>
      %c0_30 = arith.constant 0 : index
      %c0_31 = arith.constant 0 : index
      %82 = vector.load %arg16[%c0_30, %c0_31] : memref<8x1xf32, #tpu.memory_space<vmem>>, vector<8x1xf32>
      %83 = vector.broadcast %82 : vector<8x1xf32> to vector<8x256xf32>
      %84 = arith.mulf %81, %83 : vector<8x256xf32>
      %c0_32 = arith.constant 0 : index
      %c0_33 = arith.constant 0 : index
      %85 = vector.load %arg17[%c0_32, %c0_33] : memref<8x1xf32, #tpu.memory_space<vmem>>, vector<8x1xf32>
      %86 = vector.broadcast %85 : vector<8x1xf32> to vector<8x256xf32>
      %87 = arith.addf %84, %86 : vector<8x256xf32>
      %cst_34 = arith.constant 0.000000e+00 : f32
      %88 = vector.broadcast %cst_34 : f32 to vector<8x256xf32>
      %89 = arith.maximumf %87, %88 : vector<8x256xf32>
      %c0_35 = arith.constant 0 : index
      %c0_36 = arith.constant 0 : index
      %90 = vector.load %arg5[%c0_35, %c0_36] : memref<9x256xf32, #tpu.memory_space<vmem>>, vector<9x256xf32>
      %cst_37 = arith.constant 0.000000e+00 : f32
      %91 = vector.broadcast %cst_37 : f32 to vector<8x256xf32>
      %c17_i32 = arith.constant 17 : i32
      %92 = tpu.dynamic_rotate %89 by %c17_i32 dim 1 : vector<8x256xf32>, i32 -> vector<8x256xf32>
      %c0_38 = arith.constant 0 : index
      %c0_39 = arith.constant 0 : index
      %c0_40 = arith.constant 0 : index
      %93 = vector.load %arg4[%c0_38, %c0_39, %c0_40] : memref<9x8x1xf32, #tpu.memory_space<vmem>>, vector<1x8x1xf32>
      %94 = vector.shape_cast %93 : vector<1x8x1xf32> to vector<8x1xf32>
      %95 = vector.extract_strided_slice %90 {offsets = [0, 0], sizes = [1, 256], strides = [1, 1]} : vector<9x256xf32> to vector<1x256xf32>
      %96 = vector.broadcast %95 : vector<1x256xf32> to vector<8x256xf32>
      %97 = arith.mulf %92, %96 : vector<8x256xf32>
      %98 = vector.broadcast %94 : vector<8x1xf32> to vector<8x256xf32>
      %99 = arith.mulf %98, %97 : vector<8x256xf32>
      %100 = arith.addf %91, %99 : vector<8x256xf32>
      %c16_i32 = arith.constant 16 : i32
      %101 = tpu.dynamic_rotate %89 by %c16_i32 dim 1 : vector<8x256xf32>, i32 -> vector<8x256xf32>
      %c1_41 = arith.constant 1 : index
      %c0_42 = arith.constant 0 : index
      %c0_43 = arith.constant 0 : index
      %102 = vector.load %arg4[%c1_41, %c0_42, %c0_43] : memref<9x8x1xf32, #tpu.memory_space<vmem>>, vector<1x8x1xf32>
      %103 = vector.shape_cast %102 : vector<1x8x1xf32> to vector<8x1xf32>
      %104 = vector.extract_strided_slice %90 {offsets = [1, 0], sizes = [1, 256], strides = [1, 1]} : vector<9x256xf32> to vector<1x256xf32>
      %105 = vector.broadcast %104 : vector<1x256xf32> to vector<8x256xf32>
      %106 = arith.mulf %101, %105 : vector<8x256xf32>
      %107 = vector.broadcast %103 : vector<8x1xf32> to vector<8x256xf32>
      %108 = arith.mulf %107, %106 : vector<8x256xf32>
      %109 = arith.addf %100, %108 : vector<8x256xf32>
      %c15_i32 = arith.constant 15 : i32
      %110 = tpu.dynamic_rotate %89 by %c15_i32 dim 1 : vector<8x256xf32>, i32 -> vector<8x256xf32>
      %c2_44 = arith.constant 2 : index
      %c0_45 = arith.constant 0 : index
      %c0_46 = arith.constant 0 : index
      %111 = vector.load %arg4[%c2_44, %c0_45, %c0_46] : memref<9x8x1xf32, #tpu.memory_space<vmem>>, vector<1x8x1xf32>
      %112 = vector.shape_cast %111 : vector<1x8x1xf32> to vector<8x1xf32>
      %113 = vector.extract_strided_slice %90 {offsets = [2, 0], sizes = [1, 256], strides = [1, 1]} : vector<9x256xf32> to vector<1x256xf32>
      %114 = vector.broadcast %113 : vector<1x256xf32> to vector<8x256xf32>
      %115 = arith.mulf %110, %114 : vector<8x256xf32>
      %116 = vector.broadcast %112 : vector<8x1xf32> to vector<8x256xf32>
      %117 = arith.mulf %116, %115 : vector<8x256xf32>
      %118 = arith.addf %109, %117 : vector<8x256xf32>
      %c1_i32_47 = arith.constant 1 : i32
      %119 = tpu.dynamic_rotate %89 by %c1_i32_47 dim 1 : vector<8x256xf32>, i32 -> vector<8x256xf32>
      %c3_48 = arith.constant 3 : index
      %c0_49 = arith.constant 0 : index
      %c0_50 = arith.constant 0 : index
      %120 = vector.load %arg4[%c3_48, %c0_49, %c0_50] : memref<9x8x1xf32, #tpu.memory_space<vmem>>, vector<1x8x1xf32>
      %121 = vector.shape_cast %120 : vector<1x8x1xf32> to vector<8x1xf32>
      %122 = vector.extract_strided_slice %90 {offsets = [3, 0], sizes = [1, 256], strides = [1, 1]} : vector<9x256xf32> to vector<1x256xf32>
      %123 = vector.broadcast %122 : vector<1x256xf32> to vector<8x256xf32>
      %124 = arith.mulf %119, %123 : vector<8x256xf32>
      %125 = vector.broadcast %121 : vector<8x1xf32> to vector<8x256xf32>
      %126 = arith.mulf %125, %124 : vector<8x256xf32>
      %127 = arith.addf %118, %126 : vector<8x256xf32>
      %c4_51 = arith.constant 4 : index
      %c0_52 = arith.constant 0 : index
      %c0_53 = arith.constant 0 : index
      %128 = vector.load %arg4[%c4_51, %c0_52, %c0_53] : memref<9x8x1xf32, #tpu.memory_space<vmem>>, vector<1x8x1xf32>
      %129 = vector.shape_cast %128 : vector<1x8x1xf32> to vector<8x1xf32>
      %130 = vector.broadcast %129 : vector<8x1xf32> to vector<8x256xf32>
      %131 = arith.mulf %130, %89 : vector<8x256xf32>
      %132 = arith.addf %127, %131 : vector<8x256xf32>
      %c255_i32 = arith.constant 255 : i32
      %133 = tpu.dynamic_rotate %89 by %c255_i32 dim 1 : vector<8x256xf32>, i32 -> vector<8x256xf32>
      %c5_54 = arith.constant 5 : index
      %c0_55 = arith.constant 0 : index
      %c0_56 = arith.constant 0 : index
      %134 = vector.load %arg4[%c5_54, %c0_55, %c0_56] : memref<9x8x1xf32, #tpu.memory_space<vmem>>, vector<1x8x1xf32>
      %135 = vector.shape_cast %134 : vector<1x8x1xf32> to vector<8x1xf32>
      %136 = vector.extract_strided_slice %90 {offsets = [5, 0], sizes = [1, 256], strides = [1, 1]} : vector<9x256xf32> to vector<1x256xf32>
      %137 = vector.broadcast %136 : vector<1x256xf32> to vector<8x256xf32>
      %138 = arith.mulf %133, %137 : vector<8x256xf32>
      %139 = vector.broadcast %135 : vector<8x1xf32> to vector<8x256xf32>
      %140 = arith.mulf %139, %138 : vector<8x256xf32>
      %141 = arith.addf %132, %140 : vector<8x256xf32>
      %c241_i32 = arith.constant 241 : i32
      %142 = tpu.dynamic_rotate %89 by %c241_i32 dim 1 : vector<8x256xf32>, i32 -> vector<8x256xf32>
      %c6_57 = arith.constant 6 : index
      %c0_58 = arith.constant 0 : index
      %c0_59 = arith.constant 0 : index
      %143 = vector.load %arg4[%c6_57, %c0_58, %c0_59] : memref<9x8x1xf32, #tpu.memory_space<vmem>>, vector<1x8x1xf32>
      %144 = vector.shape_cast %143 : vector<1x8x1xf32> to vector<8x1xf32>
      %145 = vector.extract_strided_slice %90 {offsets = [6, 0], sizes = [1, 256], strides = [1, 1]} : vector<9x256xf32> to vector<1x256xf32>
      %146 = vector.broadcast %145 : vector<1x256xf32> to vector<8x256xf32>
      %147 = arith.mulf %142, %146 : vector<8x256xf32>
      %148 = vector.broadcast %144 : vector<8x1xf32> to vector<8x256xf32>
      %149 = arith.mulf %148, %147 : vector<8x256xf32>
      %150 = arith.addf %141, %149 : vector<8x256xf32>
      %c240_i32 = arith.constant 240 : i32
      %151 = tpu.dynamic_rotate %89 by %c240_i32 dim 1 : vector<8x256xf32>, i32 -> vector<8x256xf32>
      %c7_60 = arith.constant 7 : index
      %c0_61 = arith.constant 0 : index
      %c0_62 = arith.constant 0 : index
      %152 = vector.load %arg4[%c7_60, %c0_61, %c0_62] : memref<9x8x1xf32, #tpu.memory_space<vmem>>, vector<1x8x1xf32>
      %153 = vector.shape_cast %152 : vector<1x8x1xf32> to vector<8x1xf32>
      %154 = vector.extract_strided_slice %90 {offsets = [7, 0], sizes = [1, 256], strides = [1, 1]} : vector<9x256xf32> to vector<1x256xf32>
      %155 = vector.broadcast %154 : vector<1x256xf32> to vector<8x256xf32>
      %156 = arith.mulf %151, %155 : vector<8x256xf32>
      %157 = vector.broadcast %153 : vector<8x1xf32> to vector<8x256xf32>
      %158 = arith.mulf %157, %156 : vector<8x256xf32>
      %159 = arith.addf %150, %158 : vector<8x256xf32>
      %c239_i32 = arith.constant 239 : i32
      %160 = tpu.dynamic_rotate %89 by %c239_i32 dim 1 : vector<8x256xf32>, i32 -> vector<8x256xf32>
      %c8 = arith.constant 8 : index
      %c0_63 = arith.constant 0 : index
      %c0_64 = arith.constant 0 : index
      %161 = vector.load %arg4[%c8, %c0_63, %c0_64] : memref<9x8x1xf32, #tpu.memory_space<vmem>>, vector<1x8x1xf32>
      %162 = vector.shape_cast %161 : vector<1x8x1xf32> to vector<8x1xf32>
      %163 = vector.extract_strided_slice %90 {offsets = [8, 0], sizes = [1, 256], strides = [1, 1]} : vector<9x256xf32> to vector<1x256xf32>
      %164 = vector.broadcast %163 : vector<1x256xf32> to vector<8x256xf32>
      %165 = arith.mulf %160, %164 : vector<8x256xf32>
      %166 = vector.broadcast %162 : vector<8x1xf32> to vector<8x256xf32>
      %167 = arith.mulf %166, %165 : vector<8x256xf32>
      %168 = arith.addf %159, %167 : vector<8x256xf32>
      %c0_65 = arith.constant 0 : index
      %c0_66 = arith.constant 0 : index
      %169 = vector.load %arg14[%c0_65, %c0_66] : memref<8x1xf32, #tpu.memory_space<vmem>>, vector<8x1xf32>
      %cst_67 = arith.constant dense<0.000000e+00> : vector<8xf32>
      %170 = vector.multi_reduction <add>, %168, %cst_67 [1] : vector<8x256xf32> to vector<8xf32>
      %171 = vector.shape_cast %170 : vector<8xf32> to vector<8x1xf32>
      %172 = arith.addf %169, %171 : vector<8x1xf32>
      %c0_68 = arith.constant 0 : index
      %c0_69 = arith.constant 0 : index
      %173 = vector.load %arg14[%c0_68, %c0_69] : memref<8x1xf32, #tpu.memory_space<vmem>>, vector<8x1xf32>
      tpu.vector_store %arg14[%c0_68, %c0_69], %172 {strides = array<i32>} : memref<8x1xf32, #tpu.memory_space<vmem>>, vector<8x1xf32>,
      %c0_70 = arith.constant 0 : index
      %c0_71 = arith.constant 0 : index
      %174 = vector.load %arg15[%c0_70, %c0_71] : memref<8x1xf32, #tpu.memory_space<vmem>>, vector<8x1xf32>
      %175 = arith.mulf %168, %168 : vector<8x256xf32>
      %cst_72 = arith.constant dense<0.000000e+00> : vector<8xf32>
      %176 = vector.multi_reduction <add>, %175, %cst_72 [1] : vector<8x256xf32> to vector<8xf32>
      %177 = vector.shape_cast %176 : vector<8xf32> to vector<8x1xf32>
      %178 = arith.addf %174, %177 : vector<8x1xf32>
      %c0_73 = arith.constant 0 : index
      %c0_74 = arith.constant 0 : index
      %179 = vector.load %arg15[%c0_73, %c0_74] : memref<8x1xf32, #tpu.memory_space<vmem>>, vector<8x1xf32>
      tpu.vector_store %arg15[%c0_73, %c0_74], %178 {strides = array<i32>} : memref<8x1xf32, #tpu.memory_space<vmem>>, vector<8x1xf32>,
      %180 = vector.extract_strided_slice %89 {offsets = [0, 0], sizes = [4, 256], strides = [1, 1]} : vector<8x256xf32> to vector<4x256xf32>
      %181 = vector.extract_strided_slice %168 {offsets = [0, 0], sizes = [4, 256], strides = [1, 1]} : vector<8x256xf32> to vector<4x256xf32>
      %182 = vector.extract_strided_slice %89 {offsets = [4, 0], sizes = [4, 256], strides = [1, 1]} : vector<8x256xf32> to vector<4x256xf32>
      %183 = vector.extract_strided_slice %168 {offsets = [4, 0], sizes = [4, 256], strides = [1, 1]} : vector<8x256xf32> to vector<4x256xf32>
      %184 = tpu.concatenate %180, %181, %182, %183 in 0 : vector<4x256xf32>, vector<4x256xf32>, vector<4x256xf32>, vector<4x256xf32> -> vector<16x256xf32>
      %185 = arith.index_cast %arg1 : i32 to index
      %c0_75 = arith.constant 0 : index
      %c0_76 = arith.constant 0 : index
      %186 = vector.load %arg11[%185, %c0_75, %c0_76] : memref<1x16x256xf32, #tpu.memory_space<vmem>>, vector<1x16x256xf32>
      %187 = vector.shape_cast %186 : vector<1x16x256xf32> to vector<16x256xf32>
      %188 = vector.shape_cast %184 : vector<16x256xf32> to vector<1x16x256xf32>
      tpu.vector_store %arg11[%185, %c0_75, %c0_76], %188 {strides = array<i32>} : memref<1x16x256xf32, #tpu.memory_space<vmem>>, vector<1x16x256xf32>,
    } else {
    }
    %c2_i32 = arith.constant 2 : i32
    %16 = arith.cmpi eq, %arg0, %c2_i32 : i32
    %c0_i32_8 = arith.constant 0 : i32
    %17 = arith.cmpi eq, %arg1, %c0_i32_8 : i32
    %18 = arith.andi %16, %17 : i1
    %19 = arith.extui %18 : i1 to i32
    %c0_i32_9 = arith.constant 0 : i32
    %20 = arith.cmpi ne, %19, %c0_i32_9 : i32
    scf.if %20 {
      %c0 = arith.constant 0 : index
      %c0_12 = arith.constant 0 : index
      %24 = vector.load %arg14[%c0, %c0_12] : memref<8x1xf32, #tpu.memory_space<vmem>>, vector<8x1xf32>
      %25 = vector.extract_strided_slice %24 {offsets = [0, 0], sizes = [4, 1], strides = [1, 1]} : vector<8x1xf32> to vector<4x1xf32>
      %26 = vector.extract_strided_slice %24 {offsets = [4, 0], sizes = [4, 1], strides = [1, 1]} : vector<8x1xf32> to vector<4x1xf32>
      %27 = arith.addf %25, %26 : vector<4x1xf32>
      %cst = arith.constant 0.001953125 : f32
      %28 = vector.broadcast %cst : f32 to vector<4x1xf32>
      %29 = arith.mulf %27, %28 : vector<4x1xf32>
      %c0_13 = arith.constant 0 : index
      %c0_14 = arith.constant 0 : index
      %30 = vector.load %arg15[%c0_13, %c0_14] : memref<8x1xf32, #tpu.memory_space<vmem>>, vector<8x1xf32>
      %31 = vector.extract_strided_slice %30 {offsets = [0, 0], sizes = [4, 1], strides = [1, 1]} : vector<8x1xf32> to vector<4x1xf32>
      %32 = vector.extract_strided_slice %30 {offsets = [4, 0], sizes = [4, 1], strides = [1, 1]} : vector<8x1xf32> to vector<4x1xf32>
      %33 = arith.addf %31, %32 : vector<4x1xf32>
      %cst_15 = arith.constant 0.001953125 : f32
      %34 = vector.broadcast %cst_15 : f32 to vector<4x1xf32>
      %35 = arith.mulf %33, %34 : vector<4x1xf32>
      %36 = arith.mulf %29, %29 : vector<4x1xf32>
      %37 = arith.subf %35, %36 : vector<4x1xf32>
      %cst_16 = arith.constant 0.000000e+00 : f32
      %38 = vector.broadcast %cst_16 : f32 to vector<4x1xf32>
      %39 = arith.maximumf %37, %38 : vector<4x1xf32>
      %c0_17 = arith.constant 0 : index
      %c0_18 = arith.constant 0 : index
      %40 = vector.load %arg8[%c0_17, %c0_18] : memref<4x1xf32, #tpu.memory_space<vmem>>, vector<4x1xf32>
      %cst_19 = arith.constant 9.99999974E-6 : f32
      %41 = vector.broadcast %cst_19 : f32 to vector<4x1xf32>
      %42 = arith.addf %39, %41 : vector<4x1xf32>
      %43 = math.rsqrt %42 : vector<4x1xf32>
      %44 = arith.mulf %40, %43 : vector<4x1xf32>
      %c0_20 = arith.constant 0 : index
      %c0_21 = arith.constant 0 : index
      %45 = vector.load %arg9[%c0_20, %c0_21] : memref<4x1xf32, #tpu.memory_space<vmem>>, vector<4x1xf32>
      %46 = arith.mulf %29, %44 : vector<4x1xf32>
      %47 = arith.subf %45, %46 : vector<4x1xf32>
      %cst_22 = arith.constant 1.000000e+00 : f32
      %48 = vector.broadcast %cst_22 : f32 to vector<4x1xf32>
      %cst_23 = arith.constant 0.000000e+00 : f32
      %49 = vector.broadcast %cst_23 : f32 to vector<4x1xf32>
      %50 = tpu.concatenate %48, %44, %48, %44 in 0 : vector<4x1xf32>, vector<4x1xf32>, vector<4x1xf32>, vector<4x1xf32> -> vector<16x1xf32>
      %c0_24 = arith.constant 0 : index
      %c0_25 = arith.constant 0 : index
      %51 = vector.load %arg18[%c0_24, %c0_25] : memref<16x1xf32, #tpu.memory_space<vmem>>, vector<16x1xf32>
      tpu.vector_store %arg18[%c0_24, %c0_25], %50 {strides = array<i32>} : memref<16x1xf32, #tpu.memory_space<vmem>>, vector<16x1xf32>,
      %52 = tpu.concatenate %49, %47, %49, %47 in 0 : vector<4x1xf32>, vector<4x1xf32>, vector<4x1xf32>, vector<4x1xf32> -> vector<16x1xf32>
      %c0_26 = arith.constant 0 : index
      %c0_27 = arith.constant 0 : index
      %53 = vector.load %arg19[%c0_26, %c0_27] : memref<16x1xf32, #tpu.memory_space<vmem>>, vector<16x1xf32>
      tpu.vector_store %arg19[%c0_26, %c0_27], %52 {strides = array<i32>} : memref<16x1xf32, #tpu.memory_space<vmem>>, vector<16x1xf32>,
    } else {
    }
    %c2_i32_10 = arith.constant 2 : i32
    %21 = arith.cmpi eq, %arg0, %c2_i32_10 : i32
    %22 = arith.extui %21 : i1 to i32
    %c0_i32_11 = arith.constant 0 : i32
    %23 = arith.cmpi ne, %22, %c0_i32_11 : i32
    scf.if %23 {
      %24 = arith.index_cast %arg1 : i32 to index
      %c0 = arith.constant 0 : index
      %c0_12 = arith.constant 0 : index
      %25 = vector.load %arg11[%24, %c0, %c0_12] : memref<1x16x256xf32, #tpu.memory_space<vmem>>, vector<1x16x256xf32>
      %26 = vector.shape_cast %25 : vector<1x16x256xf32> to vector<16x256xf32>
      %c0_13 = arith.constant 0 : index
      %c0_14 = arith.constant 0 : index
      %27 = vector.load %arg18[%c0_13, %c0_14] : memref<16x1xf32, #tpu.memory_space<vmem>>, vector<16x1xf32>
      %28 = vector.broadcast %27 : vector<16x1xf32> to vector<16x256xf32>
      %29 = arith.mulf %26, %28 : vector<16x256xf32>
      %c0_15 = arith.constant 0 : index
      %c0_16 = arith.constant 0 : index
      %30 = vector.load %arg19[%c0_15, %c0_16] : memref<16x1xf32, #tpu.memory_space<vmem>>, vector<16x1xf32>
      %31 = vector.broadcast %30 : vector<16x1xf32> to vector<16x256xf32>
      %32 = arith.addf %29, %31 : vector<16x256xf32>
      %cst = arith.constant 0.000000e+00 : f32
      %33 = vector.broadcast %cst : f32 to vector<16x256xf32>
      %34 = arith.maximumf %32, %33 : vector<16x256xf32>
      %c0_17 = arith.constant 0 : index
      %c0_18 = arith.constant 0 : index
      %35 = vector.load %arg10[%c0_17, %c0_18] : memref<16x256xf32, #tpu.memory_space<vmem>>, vector<16x256xf32>
      tpu.vector_store %arg10[%c0_17, %c0_18], %34 {strides = array<i32>} : memref<16x256xf32, #tpu.memory_space<vmem>>, vector<16x256xf32>,
    } else {
    }
    return
  }
  func.func @transform_0(%arg0: i32, %arg1: i32) -> (i32, i32) {
    %c1_i32 = arith.constant 1 : i32
    %0 = arith.cmpi sle, %arg0, %c1_i32 : i32
    %c0_i32 = arith.constant 0 : i32
    %1 = arith.select %0, %arg1, %c0_i32 : i32
    %c0_i32_0 = arith.constant 0 : i32
    %c0_i32_1 = arith.constant 0 : i32
    return %1, %c0_i32_0 : i32, i32
  }
  func.func @transform_1(%arg0: i32, %arg1: i32) -> (i32, i32, i32) {
    %c0_i32 = arith.constant 0 : i32
    %c0_i32_0 = arith.constant 0 : i32
    %c0_i32_1 = arith.constant 0 : i32
    %c0_i32_2 = arith.constant 0 : i32
    return %c0_i32, %c0_i32_0, %c0_i32_1 : i32, i32, i32
  }
  func.func @transform_2(%arg0: i32, %arg1: i32) -> (i32, i32, i32) {
    %c0_i32 = arith.constant 0 : i32
    %c0_i32_0 = arith.constant 0 : i32
    %c0_i32_1 = arith.constant 0 : i32
    %c0_i32_2 = arith.constant 0 : i32
    return %c0_i32, %c0_i32_0, %c0_i32_1 : i32, i32, i32
  }
  func.func @transform_3(%arg0: i32, %arg1: i32) -> (i32, i32) {
    %c0_i32 = arith.constant 0 : i32
    %c0_i32_0 = arith.constant 0 : i32
    %c0_i32_1 = arith.constant 0 : i32
    return %c0_i32, %c0_i32_0 : i32, i32
  }
  func.func @transform_4(%arg0: i32, %arg1: i32) -> (i32, i32) {
    %c0_i32 = arith.constant 0 : i32
    %c0_i32_0 = arith.constant 0 : i32
    %c0_i32_1 = arith.constant 0 : i32
    return %c0_i32, %c0_i32_0 : i32, i32
  }
  func.func @transform_5(%arg0: i32, %arg1: i32) -> (i32, i32) {
    %c0_i32 = arith.constant 0 : i32
    %c0_i32_0 = arith.constant 0 : i32
    %c0_i32_1 = arith.constant 0 : i32
    return %c0_i32, %c0_i32_0 : i32, i32
  }
  func.func @transform_6(%arg0: i32, %arg1: i32) -> (i32, i32) {
    %c0_i32 = arith.constant 0 : i32
    %c0_i32_0 = arith.constant 0 : i32
    %c0_i32_1 = arith.constant 0 : i32
    return %c0_i32, %c0_i32_0 : i32, i32
  }
  func.func @transform_7(%arg0: i32, %arg1: i32) -> (i32, i32) {
    %c0_i32 = arith.constant 0 : i32
    %c0_i32_0 = arith.constant 0 : i32
    %c0_i32_1 = arith.constant 0 : i32
    return %c0_i32, %c0_i32_0 : i32, i32
  }
  func.func @transform_8(%arg0: i32, %arg1: i32) -> (i32, i32) {
    %c2_i32 = arith.constant 2 : i32
    %0 = arith.cmpi eq, %arg0, %c2_i32 : i32
    %c0_i32 = arith.constant 0 : i32
    %1 = arith.select %0, %arg1, %c0_i32 : i32
    %c0_i32_0 = arith.constant 0 : i32
    %c0_i32_1 = arith.constant 0 : i32
    return %1, %c0_i32_0 : i32, i32
  }
}

</mosaic_0001>

<bundles_post_ra>
// kernel: tpu_custom_call.1
= control target key start
LH: loop header
LB: loop body
LE: loop exit
PB: predicated region body
PF: predicated region fallthrough
CT: control target
= control target key end

     0   :  { %13 = vsyncpa [#allocation12], 0  ;;  %s1711_s0 = inlined_call_operand.vmem [shape: f32[8,256], index: 0, kind: input, shape index: {}]   ;;  %s1712_s1 = inlined_call_operand.vmem [shape: f32[8,8,1], index: 1, kind: input, shape index: {}]   ;;  %s1713_s2 = inlined_call_operand.vmem [shape: f32[9,8,1], index: 2, kind: input, shape index: {}]   ;;  %s1714_s3 = inlined_call_operand.vmem [shape: f32[9,256], index: 3, kind: input, shape index: {}]   ;;  %s1715_s4 = inlined_call_operand.vmem [shape: f32[4,1], index: 4, kind: input, shape index: {}]   ;;  %s1716_s5 = inlined_call_operand.vmem [shape: f32[4,1], index: 5, kind: input, shape index: {}]   ;;  %s1717_s6 = inlined_call_operand.vmem [shape: f32[4,1], index: 6, kind: input, shape index: {}]   ;;  %s1718_s7 = inlined_call_operand.vmem [shape: f32[4,1], index: 7, kind: input, shape index: {}]   ;;  %s1719_s8 = inlined_call_operand.hbm [shape: f32[16,256], index: 8, kind: output, shape index: {}]  }
   0x1   :  { %15 = vsyncpa [#allocation12 + $0x1], 0  ;;  %s1410_s27 = smov 0   ;;  %s1412_s28 = smov 0  }
   0x2   :  { %s1414_s29 = smov 0  }
   0x3 LB: > { %s1193_s30 = sadd.s32 4294967295, %s1348_s29   ;;  %s1194_s9 = sadd.s32 4294967294, %s1348_s29   ;;  %s1348_s29 = sphi %s1414_s29, %s21_s29   ;;  %s1344_s28 = sphi %s1412_s28, %s1722_s28   ;;  %s1340_s27 = sphi %s1410_s27, %s1721_s27  }
   0x4   : > { %s33_s10 = sadd.s32 1, %s1344_s28  ;;  %p1198_p0 = scmp.ge.s32.totalorder %s1348_s29, 1 }
   0x5   : > { %p35_p1 = scmp.ge.s32.totalorder %s33_s10, 3  ;;  %p289_p2 = scmp.lt.s32.totalorder %s1348_s29, 4 }
   0x7   : > { %s1724_s10 = smov (%p35_p1, %s33_s10), 0  ;;  %p290_p3 = pnand %p1198_p0, %p289_p2 }
   0x8   : > { %p337_p4 = scmp.eq.s32.totalorder (!%p290_p3), %s1340_s27, 0 }
   0x9   : > { %293 = sbr.rel (%p290_p3) target bundleno = 1028 (0x404), region = 52 }
  0x10   : > { %342 = sbr.rel (!%p337_p4) target bundleno = 23 (0x17), region = 56  ;;  %vm343_vm0 = vcmask (%p337_p4), 7168   ;;  %v1350_v0 = vmov (%p337_p4), 0.0  }
  0x11   : > { %344 = vst.msk [vmem:[#allocation3] sm:$0xff] (%p337_p4), %vm343_vm0, %v1350_v0  ;;  %345 = vst.msk [vmem:[#allocation4] sm:$0xff] (%p337_p4), %vm343_vm0, %v1350_v0 }
  0x12   : > { %346 = vst.msk [vmem:[#allocation5] sm:$0xff] (%p337_p4), %vm343_vm0, %v1350_v0  ;;  %347 = vst.msk [vmem:[#allocation6] sm:$0xff] (%p337_p4), %vm343_vm0, %v1350_v0 }
  0x17 PF: > { %p1200_p5 = scmp.ne.s32.totalorder %s1340_s27, 0 }
  0x18   : > { %v1202_v1 = vld [vmem:[%s1712_s1 + $0x10] sm:$0xff] (!%p1200_p5)  ;;  %v353_v2 = vld [vmem:[%s1712_s1] sm:$0xff] (!%p1200_p5)  ;;  %v1351_v3 = vmov (!%p1200_p5), 0   ;;  %v1203_v4 = vld [vmem:[%s1712_s1 + $0x18] sm:$0xff] (!%p1200_p5)  ;;  %v359_v10 = vlaneseq (!%p1200_p5)  ;;  %vm509_vm1 = vcmask (!%p1200_p5), 7168  }
  0x19   : > { %350 = sbr.rel (%p1200_p5) target bundleno = 323 (0x143), region = 60  ;;  %1287 = vset.pattern.permute.xlu1 (!%p1200_p5), %v1351_v3  ;;  %1286 = vset.pattern.permute.xlu0 (!%p1200_p5), %v1351_v3  ;;  %v1201_v5 = vld [vmem:[%s1712_s1 + $0x8] sm:$0xff] (!%p1200_p5)  ;;  %v1204_v7 = vld [vmem:[%s1712_s1 + $0x20] sm:$0xff] (!%p1200_p5)  ;;  %v1207_v8 = vld [vmem:[%s1712_s1 + $0x38] sm:$0xff] (!%p1200_p5) }
  0x1a   : > { %394 = vperm.xlu1 (!%p1200_p5), %1287, %v1202_v1   ;;  %356 = vperm.xlu0 (!%p1200_p5), %1286, %v353_v2   ;;  %v1205_v6 = vld [vmem:[%s1712_s1 + $0x28] sm:$0xff] (!%p1200_p5)  ;;  %v1206_v9 = vld [vmem:[%s1712_s1 + $0x30] sm:$0xff] (!%p1200_p5)  ;;  %v360_v11 = vshrl.u32 (!%p1200_p5), %v359_v10, 7  ;;  %v351_v14 = vld [vmem:[%s1711_s0] sm:$0xff] (!%p1200_p5) }
  0x1b   : > { %v352_v15 = vld [vmem:[%s1711_s0 + $0x8] sm:$0xff] (!%p1200_p5) }
  0x1c   : > { %v361_v12 = vsub.s32 (!%p1200_p5), 0, %v360_v11  ;;  %v380_v13 = vsub.s32 (!%p1200_p5), 1, %v360_v11  ;;  %v399_v16 = vsub.s32 (!%p1200_p5), 2, %v360_v11  ;;  %v418_v19 = vsub.s32 (!%p1200_p5), 3, %v360_v11 }
  0x1d   : > { %v437_v24 = vsub.s32 (!%p1200_p5), 4, %v360_v11  ;;  %v456_v31 = vsub.s32 (!%p1200_p5), 5, %v360_v11  ;;  %v475_v38 = vsub.s32 (!%p1200_p5), 6, %v360_v11  ;;  %v494_v47 = vsub.s32 (!%p1200_p5), 7, %v360_v11 }
  0x1e   : > { %413 = vperm.xlu1 (!%p1200_p5), %1287, %v1203_v4   ;;  %375 = vperm.xlu0 (!%p1200_p5), %1286, %v1201_v5   ;;  %v362_v20 = vrot.slane (!%p1200_p5), %v351_v14, %v361_v12  ;;  %v366_v21 = vrot.slane (!%p1200_p5), %v352_v15, %v361_v12  ;;  %v381_v22 = vrot.slane (!%p1200_p5), %v351_v14, %v380_v13 }
  0x1f   : > { %v385_v23 = vrot.slane (!%p1200_p5), %v352_v15, %v380_v13  ;;  %v400_v25 = vrot.slane (!%p1200_p5), %v351_v14, %v399_v16  ;;  %v404_v26 = vrot.slane (!%p1200_p5), %v352_v15, %v399_v16  ;;  %v419_v28 = vrot.slane (!%p1200_p5), %v351_v14, %v418_v19  ;;  %v504_v16 = vld [vmem:[#allocation3] sm:$0xff] (!%p1200_p5) }
  0x20   : > { %v423_v29 = vrot.slane %v352_v15, %v418_v19  ;;  %v438_v36 = vrot.slane %v351_v14, %v437_v24  ;;  %v442_v37 = vrot.slane %v352_v15, %v437_v24  ;;  %v457_v44 = vrot.slane %v351_v14, %v456_v31 }
  0x21   : > { %v461_v45 = vrot.slane %v352_v15, %v456_v31  ;;  %v476_v52 = vrot.slane %v351_v14, %v475_v38  ;;  %v480_v53 = vrot.slane %v352_v15, %v475_v38  ;;  %v495_v58 = vrot.slane %v351_v14, %v494_v47 }
  0x22   : > { %451 = vperm.xlu1 %1287, %v1205_v6   ;;  %432 = vperm.xlu0 %1286, %v1204_v7   ;;  %v499_v59 = vrot.slane %v352_v15, %v494_v47 }
  0x26   : > { %489 = vperm.xlu1 %1287, %v1207_v8   ;;  %470 = vperm.xlu0 %1286, %v1206_v9  }
  0x99   : > { %v395_v17 = vpop.permute.xlu1 %394  ;;  %v357_v18 = vpop.permute.xlu0 %356 }
  0x9a   : > { %v367_v32 = vmul.f32 %v362_v20, %v357_v18  ;;  %v368_v33 = vmul.f32 %v366_v21, %v357_v18  ;;  %v405_v39 = vmul.f32 %v400_v25, %v395_v17  ;;  %v406_v40 = vmul.f32 %v404_v26, %v395_v17  ;;  %v511_v18 = vld [vmem:[#allocation4] sm:$0xff] }
  0x9d   : > { %v414_v27 = vpop.permute.xlu1 %413  ;;  %v376_v30 = vpop.permute.xlu0 %375 }
  0x9e   : > { %v386_v34 = vmul.f32 %v381_v22, %v376_v30  ;;  %v387_v35 = vmul.f32 %v385_v23, %v376_v30  ;;  %v424_v48 = vmul.f32 %v419_v28, %v414_v27  ;;  %v425_v49 = vmul.f32 %v423_v29, %v414_v27 }
  0xa0   : > { %v388_v41 = vadd.f32 %v386_v34, %v367_v32  ;;  %v389_v42 = vadd.f32 %v387_v35, %v368_v33 }
  0xa1   : > { %v452_v43 = vpop.permute.xlu1 %451  ;;  %v433_v46 = vpop.permute.xlu0 %432 }
  0xa2   : > { %v407_v50 = vadd.f32 %v405_v39, %v388_v41  ;;  %v408_v51 = vadd.f32 %v406_v40, %v389_v42  ;;  %v443_v56 = vmul.f32 %v438_v36, %v433_v46  ;;  %v444_v57 = vmul.f32 %v442_v37, %v433_v46 }
  0xa3   : > { %v462_v61 = vmul.f32 %v457_v44, %v452_v43  ;;  %v463_v62 = vmul.f32 %v461_v45, %v452_v43 }
  0xa4   : > { %v426_v54 = vadd.f32 %v424_v48, %v407_v50  ;;  %v427_v55 = vadd.f32 %v425_v49, %v408_v51 }
  0xa5   : > { %v471_v60 = vpop.permute.xlu0 %470  ;;  %v490_v1 = vpop.permute.xlu1 %489 }
  0xa6   : > { %v445_v63 = vadd.f32 %v443_v56, %v426_v54  ;;  %v446_v0 = vadd.f32 %v444_v57, %v427_v55  ;;  %v481_v4 = vmul.f32 %v476_v52, %v471_v60  ;;  %v482_v5 = vmul.f32 %v480_v53, %v471_v60 }
  0xa7   : > { %v500_v6 = vmul.f32 %v495_v58, %v490_v1  ;;  %v501_v7 = vmul.f32 %v499_v59, %v490_v1 }
  0xa8   : > { %v464_v2 = vadd.f32 %v462_v61, %v445_v63  ;;  %v465_v3 = vadd.f32 %v463_v62, %v446_v0 }
  0xaa   : > { %v483_v8 = vadd.f32 %v481_v4, %v464_v2  ;;  %v484_v9 = vadd.f32 %v482_v5, %v465_v3 }
  0xac   : > { %v502_v10 = vadd.f32 %v500_v6, %v483_v8  ;;  %v503_v11 = vadd.f32 %v501_v7, %v484_v9 }
  0xae   : > { %v505_v12 = vadd.f32 %v503_v11, %v502_v10  ;;  %v512_v13 = vmul.f32 %v502_v10, %v502_v10  ;;  %v513_v14 = vmul.f32 %v503_v11, %v503_v11 }
  0xb0   : > { %506 = vadd.xlane.f32.xlu0 %v505_v12  ;;  %v514_v15 = vadd.f32 %v513_v14, %v512_v13 }
  0xb2   : > { %515 = vadd.xlane.f32.xlu1 %v514_v15 }
 0x13d   : > { %v507_v17 = vpop.xlane.xlu0 %506 }
 0x13e   : > { %v508_v19 = vadd.f32 %v507_v17, %v504_v16 }
 0x13f   : > { %v516_v20 = vpop.xlane.xlu1 %515 }
 0x140   : > { %510 = vst.msk [vmem:[#allocation3] sm:$0xff] %vm509_vm1, %v508_v19  ;;  %v517_v21 = vadd.f32 %v516_v20, %v511_v18 }
 0x142   : > { %518 = vst.msk [vmem:[#allocation4] sm:$0xff] %vm509_vm1, %v517_v21 }
 0x143 PF: > { %p519_p6 = scmp.eq.s32.totalorder %s1340_s27, 1 }
 0x144   : > { %v539_v34 = vld [vmem:[%s1715_s4] sm:$0xf] (%p519_p6)  ;;  %vm549_vm2 = vcmask (%p519_p6), 1043456   ;;  %vm551_vm3 = vcmask (%p519_p6), 7168  }
 0x145   : > { %523 = sbr.rel (!%p519_p6) target bundleno = 363 (0x16b), region = 64  ;;  %v543_v37 = vld [vmem:[%s1716_s5] sm:$0xf] (%p519_p6) }
 0x147   : > { %v524_v22 = vld [vmem:[#allocation3] sm:$0xff] (%p519_p6) }
 0x148   : > { %v526_v24 = vrot.slane (%p519_p6), %v524_v22, 4 }
 0x149   : > { %v530_v23 = vld [vmem:[#allocation4] sm:$0xff] (%p519_p6) }
 0x14a   : > { %v532_v25 = vrot.slane (%p519_p6), %v530_v23, 4  ;;  %v528_v26 = vadd.f32 (%p519_p6), %v526_v24, %v524_v22 }
 0x14c   : > { %v534_v27 = vadd.f32 %v532_v25, %v530_v23  ;;  %v529_v28 = vmul.f32 0.001953125, %v528_v26 }
 0x14e   : > { %v535_v29 = vmul.f32 0.001953125, %v534_v27  ;;  %v536_v30 = vmul.f32 %v529_v28, %v529_v28 }
 0x150   : > { %v537_v31 = vsub.f32 %v535_v29, %v536_v30 }
 0x152   : > { %v538_v32 = vmax.f32 %v537_v31, 0.0 }
 0x154   : > { %v540_v33 = vadd.f32 1e-05, %v538_v32 }
 0x156   : > { %1288 = vrsqrt.f32 %v540_v33 }
 0x160   : > { %v1289_v35 = vpop.eup %1288 }
 0x161   : > { %v542_v36 = vmul.f32 %v1289_v35, %v539_v34 }
 0x163   : > { %v547_v38 = vrot.slane %v542_v36, 4  ;;  %v544_v39 = vmul.f32 %v542_v36, %v529_v28 }
 0x165   : > { %v550_v40 = vsel %vm549_vm2, %v542_v36, %v547_v38  ;;  %v545_v41 = vsub.f32 %v543_v37, %v544_v39 }
 0x166   : > { %552 = vst.msk [vmem:[#allocation7] sm:$0xff] %vm551_vm3, %v550_v40 }
 0x167   : > { %v554_v42 = vrot.slane %v545_v41, 4 }
 0x169   : > { %v556_v43 = vsel %vm549_vm2, %v545_v41, %v554_v42 }
 0x16a   : > { %557 = vst.msk [vmem:[#allocation8] sm:$0xff] %vm551_vm3, %v556_v43 }
 0x16b PF: > { %p1209_p7 = scmp.ne.s32.totalorder %s1340_s27, 1 }
 0x16c   : > { %v1211_v44 = vld [vmem:[%s1712_s1 + $0x10] sm:$0xff] (!%p1209_p7)  ;;  %v563_v45 = vld [vmem:[%s1712_s1] sm:$0xff] (!%p1209_p7)  ;;  %v1352_v46 = vmov (!%p1209_p7), 0   ;;  %v1212_v47 = vld [vmem:[%s1712_s1 + $0x18] sm:$0xff] (!%p1209_p7)  ;;  %v569_v0 = vlaneseq (!%p1209_p7)  ;;  %s1353_s25 = smov (!%p1209_p7), 17   ;;  %s1354_s26 = smov (!%p1209_p7), 16  }
 0x16d   : > { %560 = sbr.rel (%p1209_p7) target bundleno = 820 (0x334), region = 68  ;;  %1291 = vset.pattern.permute.xlu1 (!%p1209_p7), %v1352_v46  ;;  %1290 = vset.pattern.permute.xlu0 (!%p1209_p7), %v1352_v46  ;;  %v1210_v48 = vld [vmem:[%s1712_s1 + $0x8] sm:$0xff] (!%p1209_p7)  ;;  %v1213_v50 = vld [vmem:[%s1712_s1 + $0x20] sm:$0xff] (!%p1209_p7)  ;;  %v1216_v51 = vld [vmem:[%s1712_s1 + $0x38] sm:$0xff] (!%p1209_p7)  ;;  %s1355_s11 = smov (!%p1209_p7), 15   ;;  %vm999_vm12 = vcmask (!%p1209_p7), 1043456  }
 0x16e   : > { %604 = vperm.xlu1 (!%p1209_p7), %1291, %v1211_v44   ;;  %566 = vperm.xlu0 (!%p1209_p7), %1290, %v563_v45   ;;  %v1214_v49 = vld [vmem:[%s1712_s1 + $0x28] sm:$0xff] (!%p1209_p7)  ;;  %v1215_v52 = vld [vmem:[%s1712_s1 + $0x30] sm:$0xff] (!%p1209_p7)  ;;  %v714_v54 = vld [vmem:[#allocation7] sm:$0xff] (!%p1209_p7)  ;;  %v570_v1 = vshrl.u32 (!%p1209_p7), %v569_v0, 7  ;;  %s1356_s12 = smov (!%p1209_p7), 1   ;;  %s1357_s13 = smov (!%p1209_p7), 127  }
 0x16f   : > { %v1217_v55 = vld [vmem:[%s1713_s2 + $0x8] sm:$0xff] (!%p1209_p7)  ;;  %v745_v56 = vld [vmem:[%s1713_s2] sm:$0xff] (!%p1209_p7)  ;;  %v1219_v57 = vld [vmem:[%s1713_s2 + $0x18] sm:$0xff] (!%p1209_p7)  ;;  %s1358_s14 = smov (!%p1209_p7), 113   ;;  %s1359_s15 = smov (!%p1209_p7), 112   ;;  %vm977_vm13 = vcmask (!%p1209_p7), 7168  }
 0x170   : > { %v1218_v58 = vld [vmem:[%s1713_s2 + $0x10] sm:$0xff] (!%p1209_p7)  ;;  %v1221_v59 = vld [vmem:[%s1713_s2 + $0x28] sm:$0xff] (!%p1209_p7)  ;;  %v1220_v60 = vld [vmem:[%s1713_s2 + $0x20] sm:$0xff] (!%p1209_p7)  ;;  %v1524_v2 = vsub.s32 (!%p1209_p7), 0, %v570_v1  ;;  %v1526_v3 = vsub.s32 (!%p1209_p7), 1, %v570_v1  ;;  %v1534_v6 = vsub.s32 (!%p1209_p7), 2, %v570_v1 }
 0x171   : > { %v722_v53 = vld [vmem:[#allocation8] sm:$0xff] (!%p1209_p7)  ;;  %v1223_v61 = vld [vmem:[%s1713_s2 + $0x38] sm:$0xff] (!%p1209_p7)  ;;  %v1222_v62 = vld [vmem:[%s1713_s2 + $0x30] sm:$0xff] (!%p1209_p7)  ;;  %v1536_v9 = vsub.s32 (!%p1209_p7), 3, %v570_v1  ;;  %v647_v14 = vsub.s32 (!%p1209_p7), 4, %v570_v1  ;;  %v1546_v21 = vsub.s32 (!%p1209_p7), 5, %v570_v1 }
 0x172   : > { %623 = vperm.xlu1 (!%p1209_p7), %1291, %v1212_v47   ;;  %585 = vperm.xlu0 (!%p1209_p7), %1290, %v1210_v48   ;;  %v1224_v63 = vld [vmem:[%s1713_s2 + $0x40] sm:$0xff] (!%p1209_p7)  ;;  %v562_v5 = vld [vmem:[%s1711_s0 + $0x8] sm:$0xff] (!%p1209_p7)  ;;  %v1548_v28 = vsub.s32 (!%p1209_p7), 6, %v570_v1  ;;  %v1552_v37 = vsub.s32 (!%p1209_p7), 7, %v570_v1  ;;  %s1360_s16 = smov (!%p1209_p7), 111  }
 0x173   : > { %v561_v4 = vld [vmem:[%s1711_s0] sm:$0xff] (!%p1209_p7)  ;;  %v576_v11 = vrot.slane (!%p1209_p7), %v562_v5, %v1524_v2  ;;  %v595_v13 = vrot.slane (!%p1209_p7), %v562_v5, %v1526_v3  ;;  %v614_v16 = vrot.slane (!%p1209_p7), %v562_v5, %v1534_v6  ;;  %v633_v19 = vrot.slane (!%p1209_p7), %v562_v5, %v1536_v9 }
 0x174   : > { %v572_v10 = vrot.slane %v561_v4, %v1524_v2  ;;  %v591_v12 = vrot.slane %v561_v4, %v1526_v3  ;;  %v610_v15 = vrot.slane %v561_v4, %v1534_v6  ;;  %v629_v18 = vrot.slane %v561_v4, %v1536_v9 }
 0x175   : > { %v648_v26 = vrot.slane %v561_v4, %v647_v14  ;;  %v652_v27 = vrot.slane %v562_v5, %v647_v14  ;;  %v667_v34 = vrot.slane %v561_v4, %v1546_v21  ;;  %v671_v35 = vrot.slane %v562_v5, %v1546_v21 }
 0x176   : > { %661 = vperm.xlu1 %1291, %v1214_v49   ;;  %642 = vperm.xlu0 %1290, %v1213_v50   ;;  %v686_v42 = vrot.slane %v561_v4, %v1548_v28  ;;  %v690_v43 = vrot.slane %v562_v5, %v1548_v28  ;;  %v705_v48 = vrot.slane %v561_v4, %v1552_v37 }
 0x177   : > { %v709_v49 = vrot.slane %v562_v5, %v1552_v37 }
 0x17a   : > { %699 = vperm.xlu1 %1291, %v1216_v51   ;;  %680 = vperm.xlu0 %1290, %v1215_v52  }
 0x17e   : > { %725 = vperm.xlu1 %1291, %v722_v53   ;;  %717 = vperm.xlu0 %1290, %v714_v54  }
 0x182   : > { %786 = vperm.xlu1 %1291, %v1217_v55   ;;  %758 = vperm.xlu0 %1290, %v745_v56  }
 0x186   : > { %842 = vperm.xlu1 %1291, %v1219_v57   ;;  %814 = vperm.xlu0 %1290, %v1218_v58  }
 0x18a   : > { %881 = vperm.xlu1 %1291, %v1221_v59   ;;  %853 = vperm.xlu0 %1290, %v1220_v60  }
 0x18e   : > { %937 = vperm.xlu1 %1291, %v1223_v61   ;;  %909 = vperm.xlu0 %1290, %v1222_v62  }
 0x192   : > { %965 = vperm.xlu0 %1290, %v1224_v63  }
 0x1ed   : > { %v605_v7 = vpop.permute.xlu1 %604  ;;  %v567_v8 = vpop.permute.xlu0 %566 }
 0x1ee   : > { %v577_v22 = vmul.f32 %v572_v10, %v567_v8  ;;  %v578_v23 = vmul.f32 %v576_v11, %v567_v8  ;;  %v615_v29 = vmul.f32 %v610_v15, %v605_v7  ;;  %v616_v30 = vmul.f32 %v614_v16, %v605_v7 }
 0x1f1   : > { %v624_v17 = vpop.permute.xlu1 %623  ;;  %v586_v20 = vpop.permute.xlu0 %585 }
 0x1f2   : > { %v596_v24 = vmul.f32 %v591_v12, %v586_v20  ;;  %v597_v25 = vmul.f32 %v595_v13, %v586_v20  ;;  %v634_v38 = vmul.f32 %v629_v18, %v624_v17  ;;  %v635_v39 = vmul.f32 %v633_v19, %v624_v17 }
 0x1f4   : > { %v598_v31 = vadd.f32 %v596_v24, %v577_v22  ;;  %v599_v32 = vadd.f32 %v597_v25, %v578_v23  ;;  %v1589_v25 = vand.u32 127, %v569_v0 }
 0x1f5   : > { %v662_v33 = vpop.permute.xlu1 %661  ;;  %v643_v36 = vpop.permute.xlu0 %642 }
 0x1f6   : > { %v617_v40 = vadd.f32 %v615_v29, %v598_v31  ;;  %v618_v41 = vadd.f32 %v616_v30, %v599_v32  ;;  %v653_v46 = vmul.f32 %v648_v26, %v643_v36  ;;  %v654_v47 = vmul.f32 %v652_v27, %v643_v36  ;;  %v1594_v29 = vld [vmem:[%s1714_s3] sm:$0xff]  ;;  %v1599_v30 = vld [vmem:[%s1714_s3 + $0x8] sm:$0xff] }
 0x1f7   : > { %v672_v51 = vmul.f32 %v667_v34, %v662_v33  ;;  %v673_v52 = vmul.f32 %v671_v35, %v662_v33  ;;  %vm769_vm4 = vcmp.lt.s32.totalorder %v1589_v25, 16  ;;  %vm742_vm5 = vcmp.lt.s32.totalorder %v1589_v25, 17 }
 0x1f8   : > { %v636_v44 = vadd.f32 %v634_v38, %v617_v40  ;;  %v637_v45 = vadd.f32 %v635_v39, %v618_v41  ;;  %v749_v0 = vrot.slane %v1594_v29, %v1524_v2  ;;  %v777_v32 = vrot.slane %v1594_v29, %v1526_v3 }
 0x1f9   : > { %v681_v50 = vpop.permute.xlu0 %680  ;;  %v700_v55 = vpop.permute.xlu1 %699  ;;  %v781_v33 = vrot.slane %v1599_v30, %v1526_v3  ;;  %v753_v35 = vrot.slane %v1599_v30, %v1524_v2  ;;  %vm797_vm6 = vcmp.lt.s32.totalorder %v1589_v25, 15  ;;  %v805_v41 = vrot.slane %v1594_v29, %v1534_v6 }
 0x1fa   : > { %v655_v53 = vadd.f32 %v653_v46, %v636_v44  ;;  %v656_v54 = vadd.f32 %v654_v47, %v637_v45  ;;  %v691_v58 = vmul.f32 %v686_v42, %v681_v50  ;;  %v692_v59 = vmul.f32 %v690_v43, %v681_v50 }
 0x1fb   : > { %v710_v60 = vmul.f32 %v705_v48, %v700_v55  ;;  %v711_v61 = vmul.f32 %v709_v49, %v700_v55  ;;  %v809_v42 = vrot.slane %v1599_v30, %v1534_v6  ;;  %vm825_vm7 = vcmp.lt.s32.totalorder %v1589_v25, 1 }
 0x1fc   : > { %v674_v56 = vadd.f32 %v672_v51, %v655_v53  ;;  %v675_v57 = vadd.f32 %v673_v52, %v656_v54  ;;  %v833_v51 = vrot.slane %v1594_v29, %v1536_v9  ;;  %v837_v52 = vrot.slane %v1599_v30, %v1536_v9 }
 0x1fd   : > { %v718_v8 = vpop.permute.xlu0 %717  ;;  %v726_v5 = vpop.permute.xlu1 %725  ;;  %vm864_vm8 = vcmp.lt.s32.totalorder %v1589_v25, 127  ;;  %v872_v9 = vrot.slane %v1594_v29, %v1546_v21  ;;  %vm892_vm9 = vcmp.lt.s32.totalorder %v1589_v25, 113  ;;  %vm920_vm10 = vcmp.lt.s32.totalorder %v1589_v25, 112 }
 0x1fe   : > { %v693_v62 = vadd.f32 %v691_v58, %v674_v56  ;;  %v694_v63 = vadd.f32 %v692_v59, %v675_v57  ;;  %vm948_vm11 = vcmp.lt.s32.totalorder %v1589_v25, 111 }
 0x200   : > { %v712_v1 = vadd.f32 %v710_v60, %v693_v62  ;;  %v713_v7 = vadd.f32 %v711_v61, %v694_v63 }
 0x201   : > { %v759_v15 = vpop.permute.xlu0 %758  ;;  %v787_v16 = vpop.permute.xlu1 %786 }
 0x202   : > { %v720_v4 = vmul.f32 %v718_v8, %v712_v1  ;;  %v721_v10 = vmul.f32 %v718_v8, %v713_v7  ;;  %v876_v1 = vrot.slane %v1599_v30, %v1546_v21  ;;  %v904_v21 = vrot.slane %v1599_v30, %v1548_v28 }
 0x204   : > { %v728_v11 = vadd.f32 %v726_v5, %v720_v4  ;;  %v729_v12 = vadd.f32 %v726_v5, %v721_v10 }
 0x205   : > { %v815_v17 = vpop.permute.xlu0 %814  ;;  %v843_v18 = vpop.permute.xlu1 %842 }
 0x206   : > { %v1558_v13 = vmax.f32 %v728_v11, 0.0  ;;  %v1560_v14 = vmax.f32 %v729_v12, 0.0 }
 0x208   : > { %738 = vrot.lane.b32.xlu0 %v1560_v14, %s1353_s25  ;;  %736 = vrot.lane.b32.xlu1 %v1558_v13, %s1353_s25 }
 0x209   : > { %v1578_v19 = vpop.permute.xlu0 %853  ;;  %v1580_v20 = vpop.permute.xlu1 %881 }
 0x20c   : > { %767 = vrot.lane.b32.xlu0 %v1560_v14, %s1354_s26  ;;  %765 = vrot.lane.b32.xlu1 %v1558_v13, %s1354_s26 }
 0x20d   : > { %v1582_v22 = vpop.permute.xlu0 %909  ;;  %v1584_v23 = vpop.permute.xlu1 %937 }
 0x210   : > { %793 = vrot.lane.b32.xlu0 %v1558_v13, %s1355_s11  ;;  %795 = vrot.lane.b32.xlu1 %v1560_v14, %s1355_s11 }
 0x211   : > { %v1586_v24 = vpop.permute.xlu0 %965 }
 0x214   : > { %823 = vrot.lane.b32.xlu0 %v1560_v14, %s1356_s12  ;;  %821 = vrot.lane.b32.xlu1 %v1558_v13, %s1356_s12 }
 0x218   : > { %862 = vrot.lane.b32.xlu0 %v1560_v14, %s1357_s13  ;;  %860 = vrot.lane.b32.xlu1 %v1558_v13, %s1357_s13 }
 0x21c   : > { %888 = vrot.lane.b32.xlu0 %v1558_v13, %s1358_s14  ;;  %890 = vrot.lane.b32.xlu1 %v1560_v14, %s1358_s14 }
 0x220   : > { %918 = vrot.lane.b32.xlu0 %v1560_v14, %s1359_s15  ;;  %916 = vrot.lane.b32.xlu1 %v1558_v13, %s1359_s15 }
 0x224   : > { %946 = vrot.lane.b32.xlu0 %v1560_v14, %s1360_s16  ;;  %944 = vrot.lane.b32.xlu1 %v1558_v13, %s1360_s16 }
 0x27a   : > { %v739_v26 = vpop.permute.xlu0 %738  ;;  %v737_v27 = vpop.permute.xlu1 %736 }
 0x27b   : > { %v743_v39 = vsel %vm742_vm5, %v737_v27, %v739_v26  ;;  %v744_v40 = vsel %vm742_vm5, %v739_v26, %v737_v27  ;;  %v900_v26 = vrot.slane %v1594_v29, %v1548_v28  ;;  %v928_v28 = vrot.slane %v1594_v29, %v1552_v37 }
 0x27c   : > { %v754_v46 = vmul.f32 %v749_v0, %v744_v40  ;;  %v755_v2 = vmul.f32 %v753_v35, %v743_v39  ;;  %v857_v35 = vmul.f32 %v1578_v19, %v1560_v14 }
 0x27e   : > { %v768_v31 = vpop.permute.xlu0 %767  ;;  %v766_v34 = vpop.permute.xlu1 %765  ;;  %v761_v56 = vmul.f32 %v759_v15, %v754_v46  ;;  %v762_v57 = vmul.f32 %v759_v15, %v755_v2 }
 0x27f   : > { %v770_v36 = vsel %vm769_vm4, %v766_v34, %v768_v31  ;;  %v771_v38 = vsel %vm769_vm4, %v768_v31, %v766_v34 }
 0x280   : > { %v782_v43 = vmul.f32 %v777_v32, %v771_v38  ;;  %v783_v44 = vmul.f32 %v781_v33, %v770_v36 }
 0x282   : > { %v794_v45 = vpop.permute.xlu0 %793  ;;  %v796_v3 = vpop.permute.xlu1 %795  ;;  %v789_v53 = vmul.f32 %v787_v16, %v782_v43  ;;  %v790_v6 = vmul.f32 %v787_v16, %v783_v44 }
 0x283   : > { %v798_v47 = vsel %vm797_vm6, %v794_v45, %v796_v3  ;;  %v799_v48 = vsel %vm797_vm6, %v796_v3, %v794_v45 }
 0x284   : > { %v810_v49 = vmul.f32 %v805_v41, %v799_v48  ;;  %v811_v50 = vmul.f32 %v809_v42, %v798_v47  ;;  %v791_v7 = vadd.f32 %v789_v53, %v761_v56  ;;  %v792_v8 = vadd.f32 %v790_v6, %v762_v57 }
 0x285   : > { %v932_v41 = vrot.slane %v1599_v30, %v1552_v37  ;;  %v1225_v37 = vld [vmem:[%s1714_s3 + $0x10] ss:$0 sm:$0xff] }
 0x286   : > { %v824_v54 = vpop.permute.xlu0 %823  ;;  %v822_v55 = vpop.permute.xlu1 %821  ;;  %v817_v60 = vmul.f32 %v815_v17, %v810_v49  ;;  %v818_v61 = vmul.f32 %v815_v17, %v811_v50 }
 0x287   : > { %v826_v58 = vsel %vm825_vm7, %v822_v55, %v824_v54  ;;  %v827_v59 = vsel %vm825_vm7, %v824_v54, %v822_v55 }
 0x288   : > { %v838_v62 = vmul.f32 %v833_v51, %v827_v59  ;;  %v839_v63 = vmul.f32 %v837_v52, %v826_v58  ;;  %v819_v16 = vadd.f32 %v817_v60, %v791_v7  ;;  %v820_v17 = vadd.f32 %v818_v61, %v792_v8 }
 0x28a   : > { %v845_v4 = vmul.f32 %v843_v18, %v838_v62  ;;  %v846_v10 = vmul.f32 %v843_v18, %v839_v63  ;;  %v863_v5 = vpop.permute.xlu0 %862  ;;  %v861_v11 = vpop.permute.xlu1 %860  ;;  %v856_v18 = vmul.f32 %v1578_v19, %v1558_v13  ;;  %v996_v62 = vrot.slane %v1560_v14, 4 }
 0x28b   : > { %v865_v12 = vsel %vm864_vm8, %v861_v11, %v863_v5  ;;  %v866_v15 = vsel %vm864_vm8, %v863_v5, %v861_v11 }
 0x28c   : > { %v847_v27 = vadd.f32 %v845_v4, %v819_v16  ;;  %v848_v0 = vadd.f32 %v846_v10, %v820_v17  ;;  %v877_v31 = vmul.f32 %v872_v9, %v865_v12  ;;  %v878_v32 = vmul.f32 %v876_v1, %v866_v15  ;;  %v972_v16 = vld [vmem:[#allocation5] sm:$0xff] }
 0x28e   : > { %v889_v33 = vpop.permute.xlu0 %888  ;;  %v891_v34 = vpop.permute.xlu1 %890  ;;  %v859_v42 = vadd.f32 %v857_v35, %v848_v0  ;;  %v858_v43 = vadd.f32 %v856_v18, %v847_v27  ;;  %v884_v44 = vmul.f32 %v1580_v20, %v877_v31  ;;  %v885_v45 = vmul.f32 %v1580_v20, %v878_v32  ;;  %v1226_v20 = vld [vmem:[%s1714_s3 + $0x18] ss:$0 sm:$0xff] }
 0x28f   : > { %v893_v36 = vsel %vm892_vm9, %v889_v33, %v891_v34  ;;  %v894_v38 = vsel %vm892_vm9, %v891_v34, %v889_v33 }
 0x290   : > { %v905_v39 = vmul.f32 %v900_v26, %v893_v36  ;;  %v906_v40 = vmul.f32 %v904_v21, %v894_v38  ;;  %v886_v30 = vadd.f32 %v884_v44, %v858_v43  ;;  %v887_v50 = vadd.f32 %v885_v45, %v859_v42  ;;  %v979_v26 = vld [vmem:[#allocation6] sm:$0xff] }
 0x292   : > { %v919_v3 = vpop.permute.xlu0 %918  ;;  %v917_v19 = vpop.permute.xlu1 %916  ;;  %v912_v47 = vmul.f32 %v1582_v22, %v905_v39  ;;  %v913_v48 = vmul.f32 %v1582_v22, %v906_v40 }
 0x293   : > { %v921_v46 = vsel %vm920_vm10, %v917_v19, %v919_v3  ;;  %v922_v2 = vsel %vm920_vm10, %v919_v3, %v917_v19 }
 0x294   : > { %v933_v29 = vmul.f32 %v928_v28, %v921_v46  ;;  %v934_v49 = vmul.f32 %v932_v41, %v922_v2  ;;  %v914_v54 = vadd.f32 %v912_v47, %v886_v30  ;;  %v915_v55 = vadd.f32 %v913_v48, %v887_v50 }
 0x296   : > { %v940_v51 = vmul.f32 %v1584_v23, %v933_v29  ;;  %v941_v25 = vmul.f32 %v1584_v23, %v934_v49  ;;  %v947_v52 = vpop.permute.xlu0 %946  ;;  %v945_v53 = vpop.permute.xlu1 %944  ;;  %v995_v23 = vrot.slane %v1558_v13, 4 }
 0x297   : > { %v949_v6 = vsel %vm948_vm11, %v945_v53, %v947_v52  ;;  %v950_v22 = vsel %vm948_vm11, %v947_v52, %v945_v53 }
 0x298   : > { %v961_v56 = vmul.f32 %v1225_v37, %v949_v6  ;;  %v962_v57 = vmul.f32 %v1226_v20, %v950_v22  ;;  %v942_v58 = vadd.f32 %v940_v51, %v914_v54  ;;  %v943_v59 = vadd.f32 %v941_v25, %v915_v55 }
 0x29a   : > { %v968_v60 = vmul.f32 %v1586_v24, %v961_v56  ;;  %v969_v61 = vmul.f32 %v1586_v24, %v962_v57 }
 0x29c   : > { %v970_v63 = vadd.f32 %v968_v60, %v942_v58  ;;  %v971_v9 = vadd.f32 %v969_v61, %v943_v59 }
 0x29e   : > { %v989_v1 = vrot.slane %v970_v63, 4  ;;  %v990_v7 = vrot.slane %v971_v9, 4  ;;  %v1002_v8 = vsel %vm999_vm12, %v995_v23, %v970_v63  ;;  %v1003_v4 = vsel %vm999_vm12, %v996_v62, %v971_v9 }
 0x29f   : > { %1009 = vst [vmem:[#allocation2 + $0x10] sm:$0xff] %v1002_v8  ;;  %1010 = vst [vmem:[#allocation2 + $0x18] sm:$0xff] %v1003_v4  ;;  %v973_v10 = vadd.f32 %v971_v9, %v970_v63  ;;  %v980_v5 = vmul.f32 %v970_v63, %v970_v63  ;;  %v981_v11 = vmul.f32 %v971_v9, %v971_v9 }
 0x2a0   : > { %v1000_v12 = vsel %vm999_vm12, %v1558_v13, %v989_v1  ;;  %v1001_v24 = vsel %vm999_vm12, %v1560_v14, %v990_v7 }
 0x2a1   : > { %1007 = vst [vmem:[#allocation2] sm:$0xff] %v1000_v12  ;;  %1008 = vst [vmem:[#allocation2 + $0x8] sm:$0xff] %v1001_v24  ;;  %974 = vadd.xlane.f32.xlu1 %v973_v10  ;;  %v982_v15 = vadd.f32 %v981_v11, %v980_v5 }
 0x2a3   : > { %983 = vadd.xlane.f32.xlu0 %v982_v15 }
 0x32e   : > { %v975_v17 = vpop.xlane.xlu1 %974 }
 0x32f   : > { %v976_v21 = vadd.f32 %v975_v17, %v972_v16 }
 0x330   : > { %v984_v18 = vpop.xlane.xlu0 %983 }
 0x331   : > { %978 = vst.msk [vmem:[#allocation5] sm:$0xff] %vm977_vm13, %v976_v21  ;;  %v985_v27 = vadd.f32 %v984_v18, %v979_v26 }
 0x333   : > { %986 = vst.msk [vmem:[#allocation6] sm:$0xff] %vm977_vm13, %v985_v27 }
 0x334 PF: > { %p1011_p8 = scmp.eq.s32.totalorder %s1340_s27, 2 }
 0x335   : > { %v1031_v28 = vld [vmem:[%s1717_s6] sm:$0xf] (%p1011_p8)  ;;  %vm1041_vm14 = vcmask (%p1011_p8), 1043456   ;;  %vm1043_vm15 = vcmask (%p1011_p8), 7168  }
 0x336   : > { %1015 = sbr.rel (!%p1011_p8) target bundleno = 860 (0x35c), region = 72  ;;  %v1035_v43 = vld [vmem:[%s1718_s7] sm:$0xf] (%p1011_p8) }
 0x338   : > { %v1016_v13 = vld [vmem:[#allocation5] sm:$0xff] (%p1011_p8) }
 0x339   : > { %v1018_v0 = vrot.slane (%p1011_p8), %v1016_v13, 4 }
 0x33a   : > { %v1022_v14 = vld [vmem:[#allocation6] sm:$0xff] (%p1011_p8) }
 0x33b   : > { %v1024_v31 = vrot.slane (%p1011_p8), %v1022_v14, 4  ;;  %v1020_v32 = vadd.f32 (%p1011_p8), %v1018_v0, %v1016_v13 }
 0x33d   : > { %v1026_v33 = vadd.f32 %v1024_v31, %v1022_v14  ;;  %v1021_v34 = vmul.f32 0.001953125, %v1020_v32 }
 0x33f   : > { %v1027_v35 = vmul.f32 0.001953125, %v1026_v33  ;;  %v1028_v36 = vmul.f32 %v1021_v34, %v1021_v34 }
 0x341   : > { %v1029_v38 = vsub.f32 %v1027_v35, %v1028_v36 }
 0x343   : > { %v1030_v39 = vmax.f32 %v1029_v38, 0.0 }
 0x345   : > { %v1032_v40 = vadd.f32 1e-05, %v1030_v39 }
 0x347   : > { %1292 = vrsqrt.f32 %v1032_v40 }
 0x351   : > { %v1293_v41 = vpop.eup %1292 }
 0x352   : > { %v1034_v42 = vmul.f32 %v1293_v41, %v1031_v28 }
 0x354   : > { %v1039_v44 = vrot.slane %v1034_v42, 4  ;;  %v1036_v45 = vmul.f32 %v1034_v42, %v1021_v34 }
 0x356   : > { %v1042_v3 = vsel %vm1041_vm14, 1.0, %v1039_v44  ;;  %v1037_v19 = vsub.f32 %v1035_v43, %v1036_v45 }
 0x357   : > { %1044 = vst.msk [vmem:[#allocation9] sm:$0xff] %vm1043_vm15, %v1042_v3  ;;  %1045 = vst.msk [vmem:[#allocation9 + $0x8] sm:$0xff] %vm1043_vm15, %v1042_v3 }
 0x358   : > { %v1047_v46 = vrot.slane %v1037_v19, 4 }
 0x35a   : > { %v1049_v2 = vsel %vm1041_vm14, 0.0, %v1047_v46 }
 0x35b   : > { %1050 = vst.msk [vmem:[#allocation10] sm:$0xff] %vm1043_vm15, %v1049_v2  ;;  %1051 = vst.msk [vmem:[#allocation10 + $0x8] sm:$0xff] %vm1043_vm15, %v1049_v2 }
 0x35c PF: > { %p1228_p9 = scmp.ne.s32.totalorder %s1340_s27, 2 }
 0x35d   : > { %v1361_v29 = vmov (!%p1228_p9), 0   ;;  %v1058_v20 = vld [vmem:[#allocation2] sm:$0xff] (!%p1228_p9)  ;;  %v1059_v30 = vld [vmem:[#allocation2 + $0x8] sm:$0xff] (!%p1228_p9)  ;;  %v1060_v53 = vld [vmem:[#allocation2 + $0x10] sm:$0xff] (!%p1228_p9) }
 0x35e   : > { %1054 = sbr.rel (%p1228_p9) target bundleno = 1004 (0x3ec), region = 76  ;;  %v1062_v48 = vld [vmem:[#allocation9] sm:$0xff] (!%p1228_p9)  ;;  %1295 = vset.pattern.permute.xlu1 (!%p1228_p9), %v1361_v29  ;;  %1294 = vset.pattern.permute.xlu0 (!%p1228_p9), %v1361_v29  ;;  %v1063_v37 = vld [vmem:[#allocation9 + $0x8] sm:$0xff] (!%p1228_p9) }
 0x35f   : > { %1066 = vperm.xlu0 (!%p1228_p9), %1294, %v1062_v48   ;;  %v1061_v6 = vld [vmem:[#allocation2 + $0x18] sm:$0xff] (!%p1228_p9) }
 0x362   : > { %v1078_v47 = vld [vmem:[#allocation10] sm:$0xff] (!%p1228_p9)  ;;  %v1079_v49 = vld [vmem:[#allocation10 + $0x8] sm:$0xff] (!%p1228_p9) }
 0x363   : > { %1082 = vperm.xlu1 (!%p1228_p9), %1295, %v1078_v47   ;;  %1071 = vperm.xlu0 (!%p1228_p9), %1294, %v1063_v37  }
 0x367   : > { %1087 = vperm.xlu1 %1295, %v1079_v49  }
 0x3de   : > { %v1067_v51 = vpop.permute.xlu0 %1066 }
 0x3df   : > { %v1074_v25 = vmul.f32 %v1067_v51, %v1058_v20  ;;  %v1075_v52 = vmul.f32 %v1067_v51, %v1059_v30 }
 0x3e2   : > { %v1083_v50 = vpop.permute.xlu1 %1082  ;;  %v1072_v55 = vpop.permute.xlu0 %1071 }
 0x3e3   : > { %v1090_v22 = vadd.f32 %v1083_v50, %v1074_v25  ;;  %v1091_v54 = vadd.f32 %v1083_v50, %v1075_v52  ;;  %v1076_v58 = vmul.f32 %v1072_v55, %v1060_v53  ;;  %v1077_v59 = vmul.f32 %v1072_v55, %v1061_v6 }
 0x3e5   : > { %v1094_v56 = vmax.f32 %v1090_v22, 0.0  ;;  %v1095_v57 = vmax.f32 %v1091_v54, 0.0 }
 0x3e6   : > { %v1088_v60 = vpop.permute.xlu1 %1087 }
 0x3e7   : > { %1098 = vst [vmem:[#allocation11] sm:$0xff] %v1094_v56  ;;  %1099 = vst [vmem:[#allocation11 + $0x8] sm:$0xff] %v1095_v57  ;;  %v1092_v61 = vadd.f32 %v1088_v60, %v1076_v58  ;;  %v1093_v62 = vadd.f32 %v1088_v60, %v1077_v59 }
 0x3e9   : > { %v1096_v63 = vmax.f32 %v1092_v61, 0.0  ;;  %v1097_v9 = vmax.f32 %v1093_v62, 0.0 }
 0x3eb   : > { %1100 = vst [vmem:[#allocation11 + $0x10] sm:$0xff] %v1096_v63  ;;  %1101 = vst [vmem:[#allocation11 + $0x18] sm:$0xff] %v1097_v9 }
 0x3ec PF: > { %p1677_p10 = scmp.eq.s32.totalorder %s1193_s30, 2  ;;  %s1362_s13 = smov [#allocation11]  }
 0x3ed   : > { %s1119_s14 = sshll.u32 %s1362_s13, 4  ;;  %s1120_s14 = int_to_ptr.vmem [resolvable:$true] %s1119_s14 }
 0x3ee   : > { %s1296_s15 = scalar_lea.vmem %s1120_s14, 512  ;;  %s1302_s16 = scalar_lea.vmem %s1120_s14, 1024 }
 0x3ef   : > { %p1297_p11 = scmp.ne.s32.totalorder %s1120_s14, %s1296_s15  ;;  %p1303_p0 = scmp.lt.s32.totalorder %s1120_s14, %s1120_s14 }
 0x3f0   : > { %p1304_p1 = scmp.lt.s32.totalorder %s1302_s16, %s1296_s15 }
 0x3f1   : > { %p1298_p12 = pnand %p1297_p11, %p1677_p10 }
 0x3f2   : > { %p1305_p2 = por %p1304_p1, %p1303_p0 }
 0x3f3   : > { %p1299_p13 = pneg %p1298_p12 }
 0x3f5   : > { %p1306_p3 = pnand %p1305_p2, %p1299_p13 }
 0x3f7   : > { %1309 = shalt.err (!%p1306_p3)
}
 0x3f8   : > { %s1310_s18 = scalar_lea.hbm %s1719_s8, 512 }
 0x3f9   : > { %p1311_p4 = scmp.ne.s32.totalorder %s1719_s8, %s1310_s18  ;;  %p1316_p7 = scmp.lt.u32.totalorder %s1310_s18, %s1719_s8 }
 0x3fb   : > { %p1312_p5 = pnand %p1311_p4, %p1677_p10 }
 0x3fd   : > { %p1313_p6 = pneg %p1312_p5 }
 0x3ff   : > { %p1318_p8 = pnand %p1316_p7, %p1313_p6 }
 0x401   : > { %1321 = shalt.err (!%p1318_p8)
}
 0x402   : > { %s1363_s23 = smov 256   ;;  %s1364_s24 = smov 16  }
 0x403   : > { %1237 = dma.vmem_to_hbm [thread:$0]  (%p1677_p10), %s1120_s14, 512, %s1719_s8, [#allocation12], %s1363_s23, %s1363_s23, %s1364_s24  }
 0x404 PF: > { %p1245_p9 = scmp.ge.s32.totalorder %s1348_s29, 2  ;;  %p1246_p11 = scmp.eq.s32.totalorder %s1194_s9, 2 }
 0x406   : > { %p1241_p12 = pnand %p1246_p11, %p1245_p9 }
 0x408   : > { %1335 = dma.done.wait (!%p1241_p12), [#allocation12], 512  }
 0x409   : > { %1337 = vsyncadd (!%p1241_p12), [#allocation12], 4294966784  ;;  %s21_s29 = sadd.s32 1, %s1348_s29   ;;  %s1721_s27 = smov %s1344_s28 }
 0x40a   : > { %p18_p13 = scmp.ge.s32.totalorder %s21_s29, 5   ;;  %s1722_s28 = smov %s1724_s10 }
 0x40c   :  { %20 = sbr.rel (!%p18_p13) target bundleno = 3 (0x3), region = 135 }
 0x413   :  { %1140 = vsyncpa [#allocation12], 1 }
 0x414   :  { %1142 = vsyncpa [#allocation12 + $0x1], 1 }

</bundles_post_ra>
